<compile_context>
chip_gen: v7x
topology: tpu7x:2x2x1
jax: 0.10.0
libtpu: 0.0.40
codegen_flags: <defaults>
</compile_context>

<pallas_src>
import functools
import math

import jax
import jax.numpy as jnp
from jax.experimental import pallas as pl
from jax.experimental.pallas import tpu as pltpu


def mha_kernel(x_ref, wqkv_ref, bqkv_ref, wo_ref, bo_ref, o_ref, *,
               num_heads: int, head_dim: int, batched_heads: bool):
    blk_b, seq, embed = x_ref.shape
    m = blk_b * seq

    x2 = x_ref[...].reshape(m, embed)
    if x2.dtype != jnp.bfloat16:
        x2 = x2.astype(jnp.bfloat16)

    # Fused QKV projection (1/sqrt(head_dim) already folded into the Q columns by fuse_params):
    # f32 accumulate, f32 bias add, then a single bf16 cast of the whole qkv value.
    qkv = jnp.dot(x2, wqkv_ref[...], preferred_element_type=jnp.float32) + bqkv_ref[...]
    qkv = qkv.astype(jnp.bfloat16).reshape(blk_b, seq, 3 * embed)

    def softmax_last(s):
        # numerically stable softmax along the key axis (matches F.softmax), f32 math,
        # EUP approx reciprocal for the normalization.
        s = s - jnp.max(s, axis=-1, keepdims=True)
        p = jnp.exp(s)
        return p * pl.reciprocal(jnp.sum(p, axis=-1, keepdims=True), approx=True)

    if batched_heads:
        # Q/K/V slabs are sliced at multiple-of-E lane offsets, then split into heads once.
        q = qkv[:, :, :embed].reshape(blk_b, seq, num_heads, head_dim)
        k = qkv[:, :, embed:2 * embed].reshape(blk_b, seq, num_heads, head_dim)
        v = qkv[:, :, 2 * embed:].reshape(blk_b, seq, num_heads, head_dim)

        p = softmax_last(jnp.einsum("bqhd,bkhd->bhqk", q, k,
                                    preferred_element_type=jnp.float32))
        # Context comes out head-interleaved: (b, S, H, hd) == lane-dense (b, S, E).
        ctx = jnp.einsum("bhqk,bkhd->bqhd", p.astype(jnp.bfloat16), v,
                         preferred_element_type=jnp.float32)
    else:
        # Fallback: static per-head loop of single-batch-dim 3-D einsums; context is still
        # assembled as one value and stored lane-dense in a single store.
        heads = []
        for h in range(num_heads):
            lo = h * head_dim
            qh = qkv[:, :, lo:lo + head_dim]
            kh = qkv[:, :, embed + lo:embed + lo + head_dim]
            vh = qkv[:, :, 2 * embed + lo:2 * embed + lo + head_dim]
            p = softmax_last(jnp.einsum("bqd,bkd->bqk", qh, kh,
                                        preferred_element_type=jnp.float32))
            heads.append(jnp.einsum("bqk,bkd->bqd", p.astype(jnp.bfloat16), vh,
                                    preferred_element_type=jnp.float32))
        ctx = jnp.concatenate(heads, axis=-1)

    # Output projection on the concatenated context; one lane-dense store of the full block.
    ctx = ctx.reshape(m, embed).astype(jnp.bfloat16)
    out = jnp.dot(ctx, wo_ref[...], preferred_element_type=jnp.float32) + bo_ref[...]
    o_ref[...] = out.reshape(blk_b, seq, embed).astype(o_ref.dtype)


def _pick_block_b(B: int, S: int, E: int, H: int, out_itemsize: int) -> int:
    """Pick block_b: prefer ~256+ matmul rows per step (feeds v5e/v6e/v7x MXUs), but keep
    the per-step working set well inside a 64 MiB (v7x) scoped-VMEM budget."""
    def step_bytes(bb):
        m = bb * S
        return (2 * m * E * 2                 # x block, bf16, double-buffered
                + 2 * m * E * out_itemsize    # out block, double-buffered
                + m * 3 * E * (4 + 2)         # qkv f32 accumulate + bf16 copy
                + 2 * bb * H * S * S * 4      # scores + probs (f32)
                + 2 * m * E * 4)              # context / projection accumulators (f32)

    budget = 20 << 20
    divs = [d for d in range(1, B + 1) if B % d == 0 and step_bytes(d) <= budget]
    if not divs:
        return 1
    for d in divs:                 # smallest block that already gives >=256 rows
        if d * S >= 256:
            return d
    return divs[-1]                # otherwise the biggest block that fits


def _vmem_limit_bytes(bb: int, S: int, E: int, H: int, out_itemsize: int) -> int:
    m = bb * S
    est = (2 * m * E * 2 + 2 * m * E * out_itemsize                    # x / out blocks
           + 2 * (E * 3 * E * 2 + 3 * E * 4 + E * E * 2 + E * 4)       # weights / biases
           + m * 3 * E * (4 + 2)                                        # qkv f32 + bf16
           + 2 * bb * H * S * S * 4                                     # scores + probs
           + 2 * m * E * 4)                                             # context / out accums
    return int(min(64 << 20, max(32 << 20, est * 3 // 2)))


def _mha_call(x, fused, *, num_heads, head_dim, block_b, batched_heads,
              single_buffer_weights, out_dtype, vmem_limit):
    B, S, E = x.shape
    kernel = functools.partial(mha_kernel, num_heads=num_heads, head_dim=head_dim,
                               batched_heads=batched_heads)

    def resident(shape):
        # Weights/biases never change block index -> keep them VMEM-resident; single-buffer
        # them so the pipeline doesn't reserve a useless second copy.
        if single_buffer_weights:
            return pl.BlockSpec(shape, lambda b: (0,) * len(shape),
                                pipeline_mode=pl.Buffered(1))
        return pl.BlockSpec(shape, lambda b: (0,) * len(shape))

    return pl.pallas_call(
        kernel,
        out_shape=jax.ShapeDtypeStruct((B, S, E), out_dtype),
        grid_spec=pltpu.PrefetchScalarGridSpec(
            num_scalar_prefetch=0,
            grid=(B // block_b,),
            in_specs=[
                pl.BlockSpec((block_b, S, E), lambda b: (b, 0, 0)),   # x (bf16)
                resident((E, 3 * E)),                                 # fused QKV weight (bf16)
                resident((1, 3 * E)),                                 # fused QKV bias  (f32)
                resident((E, E)),                                     # output weight   (bf16)
                resident((1, E)),                                     # output bias     (f32)
            ],
            out_specs=pl.BlockSpec((block_b, S, E), lambda b: (b, 0, 0)),
        ),
        compiler_params=pltpu.CompilerParams(
            dimension_semantics=("parallel",),
            vmem_limit_bytes=vmem_limit),
    )(x, fused["w_qkv"], fused["b_qkv"], fused["wo"], fused["bo"])


def multi_head_attention(x, fused, *, num_heads: int, block_b=None):
    """x: (B, S, E).  fused: dict from fuse_params() (bf16 weights, f32 biases)."""
    B, S, E = x.shape
    head_dim = E // num_heads
    assert head_dim * num_heads == E, "embed_dim must be divisible by num_heads"

    out_dtype = x.dtype
    out_itemsize = jnp.dtype(out_dtype).itemsize
    if block_b is None:
        block_b = _pick_block_b(B, S, E, num_heads, out_itemsize)
    assert B % block_b == 0

    # Stream activations as bf16 (half-width DMA); all accumulation/softmax stays f32 in-kernel.
    x = x.astype(jnp.bfloat16)
    vmem_limit = _vmem_limit_bytes(block_b, S, E, num_heads, out_itemsize)

    # Preferred config first (head-batched einsums + single-buffered weights); fall back to the
    # conservative variants only if a feature is unavailable on this JAX / TPU generation.
    last_err = None
    for batched_heads in (True, False):
        for single_buf in (True, False):
            try:
                return _mha_call(x, fused, num_heads=num_heads, head_dim=head_dim,
                                 block_b=block_b, batched_heads=batched_heads,
                                 single_buffer_weights=single_buf,
                                 out_dtype=out_dtype, vmem_limit=vmem_limit)
            except Exception as err:  # noqa: BLE001 - feature availability fallback only
                last_err = err
    raise last_err


def init_params(key, embed_dim: int):
    """Deterministic parameter init.  PyTorch nn.Linear stores W as (out,in) and computes
    y = x @ W.T + b; here we store the already-transposed (in,out) matrix so y = x @ W + b."""
    ks = jax.random.split(key, 8)
    bound = 1.0 / math.sqrt(embed_dim)

    def lin(kw, kb):
        w = jax.random.uniform(kw, (embed_dim, embed_dim), jnp.float32, -bound, bound)
        b = jax.random.uniform(kb, (1, embed_dim), jnp.float32, -bound, bound)
        return w, b

    wq, bq = lin(ks[0], ks[1])
    wk, bk = lin(ks[2], ks[3])
    wv, bv = lin(ks[4], ks[5])
    wo, bo = lin(ks[6], ks[7])
    return dict(wq=wq, wk=wk, wv=wv, wo=wo, bq=bq, bk=bk, bv=bv, bo=bo)


def fuse_params(params, *, num_heads: int):
    """One-time prep for the kernel: fuse Q/K/V weights into a single (E, 3E) matrix,
    fold the 1/sqrt(head_dim) softmax scale into the Q columns, cast weights to bf16
    for the MXU (biases stay f32 and are added after f32 accumulation)."""
    E = params["wq"].shape[0]
    head_dim = E // num_heads
    inv_scale = 1.0 / math.sqrt(head_dim)
    w_qkv = jnp.concatenate(
        [params["wq"] * inv_scale, params["wk"], params["wv"]], axis=1)
    b_qkv = jnp.concatenate(
        [params["bq"] * inv_scale, params["bk"], params["bv"]], axis=1)
    return dict(
        w_qkv=w_qkv.astype(jnp.bfloat16),
        b_qkv=b_qkv.astype(jnp.float32),
        wo=params["wo"].astype(jnp.bfloat16),
        bo=params["bo"].astype(jnp.float32),
    )


def reference_mha(x, params, *, num_heads: int):
    """Pure-JAX f32 reference mirroring the PyTorch forward (eval mode, mask=None)."""
    B, S, E = x.shape
    hd = E // num_heads
    q = x @ params["wq"] + params["bq"]
    k = x @ params["wk"] + params["bk"]
    v = x @ params["wv"] + params["bv"]

    def split(t):  # (B,S,E) -> (B,H,S,hd)
        return t.reshape(B, S, num_heads, hd).transpose(0, 2, 1, 3)

    q, k, v = split(q), split(k), split(v)
    scores = jnp.einsum("bhqd,bhkd->bhqk", q, k) / math.sqrt(hd)
    attn = jax.nn.softmax(scores, axis=-1)
    ctx = jnp.einsum("bhqk,bhkd->bhqd", attn, v)
    ctx = ctx.transpose(0, 2, 1, 3).reshape(B, S, E)
    return ctx @ params["wo"] + params["bo"]


if __name__ == "__main__":
    B, S, E, H = 2, 8, 32, 4

    key = jax.random.PRNGKey(0)
    kx, kp = jax.random.split(key)
    x = jax.random.normal(kx, (B, S, E), jnp.float32)
    params = init_params(kp, E)
    fused = fuse_params(params, num_heads=H)

    out = multi_head_attention(x, fused, num_heads=H)
    out = jax.block_until_ready(out)

    ref = reference_mha(x, params, num_heads=H)
    assert out.shape == (B, S, E)
    # bf16 MXU operands + approx reciprocal -> looser tolerance vs. the pure-f32 reference.
    assert jnp.allclose(out, ref, atol=5e-2, rtol=5e-2), (
        f"kernel/reference mismatch, max abs diff={jnp.max(jnp.abs(out - ref))}")

    print("KERNEL_OK")
</pallas_src>

<mosaic_0001>
module attributes {stable_mosaic.version = 11 : i64} {
  func.func @mha_kernel(%arg0: i32, %arg1: memref<2x8x32xbf16, #tpu.memory_space<vmem>>, %arg2: memref<32x96xbf16, #tpu.memory_space<vmem>>, %arg3: memref<1x96xf32, #tpu.memory_space<vmem>>, %arg4: memref<32x32xbf16, #tpu.memory_space<vmem>>, %arg5: memref<1x32xf32, #tpu.memory_space<vmem>>, %arg6: memref<2x8x32xf32, #tpu.memory_space<vmem>>) attributes {dimension_semantics = [#tpu.dimension_semantics<parallel>], iteration_bounds = array<i64: 1>, scalar_prefetch = 0 : i64, scratch_operands = 0 : i64, tpu.core_type = #tpu.core_type<tc>, window_params = [{transform_indices = @transform_0, window_bounds = array<i64: 2, 8, 32>}, {pipeline_mode = #tpu.pipeline_mode<synchronous>, transform_indices = @transform_1, window_bounds = array<i64: 32, 96>}, {pipeline_mode = #tpu.pipeline_mode<synchronous>, transform_indices = @transform_2, window_bounds = array<i64: 1, 96>}, {pipeline_mode = #tpu.pipeline_mode<synchronous>, transform_indices = @transform_3, window_bounds = array<i64: 32, 32>}, {pipeline_mode = #tpu.pipeline_mode<synchronous>, transform_indices = @transform_4, window_bounds = array<i64: 1, 32>}, {transform_indices = @transform_5, window_bounds = array<i64: 2, 8, 32>}]} {
    %c0 = arith.constant 0 : index
    %c0_0 = arith.constant 0 : index
    %c0_1 = arith.constant 0 : index
    %0 = vector.load %arg1[%c0, %c0_0, %c0_1] : memref<2x8x32xbf16, #tpu.memory_space<vmem>>, vector<2x8x32xbf16>
    %1 = vector.shape_cast %0 : vector<2x8x32xbf16> to vector<16x32xbf16>
    %c0_2 = arith.constant 0 : index
    %c0_3 = arith.constant 0 : index
    %2 = vector.load %arg2[%c0_2, %c0_3] : memref<32x96xbf16, #tpu.memory_space<vmem>>, vector<32x96xbf16>
    %cst = arith.constant dense<0.000000e+00> : vector<16x96xf32>
    %3 = tpu.matmul %1, %2, %cst {dimension_numbers = #tpu.dot_dimension_numbers<[1], [0], [0], [1], [0, 0, 1, 1], [], []>} : vector<16x32xbf16>, vector<32x96xbf16>, vector<16x96xf32> -> vector<16x96xf32>
    %c0_4 = arith.constant 0 : index
    %c0_5 = arith.constant 0 : index
    %4 = vector.load %arg3[%c0_4, %c0_5] : memref<1x96xf32, #tpu.memory_space<vmem>>, vector<1x96xf32>
    %5 = vector.broadcast %4 : vector<1x96xf32> to vector<16x96xf32>
    %6 = arith.addf %3, %5 : vector<16x96xf32>
    %7 = arith.truncf %6 : vector<16x96xf32> to vector<16x96xbf16>
    %8 = vector.shape_cast %7 : vector<16x96xbf16> to vector<2x8x96xbf16>
    %9 = vector.extract_strided_slice %8 {offsets = [0, 0, 0], sizes = [2, 8, 8], strides = [1, 1, 1]} : vector<2x8x96xbf16> to vector<2x8x8xbf16>
    %10 = vector.extract_strided_slice %8 {offsets = [0, 0, 32], sizes = [2, 8, 8], strides = [1, 1, 1]} : vector<2x8x96xbf16> to vector<2x8x8xbf16>
    %11 = vector.extract_strided_slice %8 {offsets = [0, 0, 64], sizes = [2, 8, 8], strides = [1, 1, 1]} : vector<2x8x96xbf16> to vector<2x8x8xbf16>
    "tpu.trace_start"() <{level = 10 : i32, message = "bqd,bkd->bqk"}> : () -> ()
    %cst_6 = arith.constant dense<0.000000e+00> : vector<2x8x8xf32>
    %12 = tpu.matmul %9, %10, %cst_6 {dimension_numbers = #tpu.dot_dimension_numbers<[2], [2], [1], [1], [0, 0, 0, 1, 1, 1], [0], [0]>} : vector<2x8x8xbf16>, vector<2x8x8xbf16>, vector<2x8x8xf32> -> vector<2x8x8xf32>
    "tpu.trace_stop"() : () -> ()
    %cst_7 = arith.constant dense<0xFF800000> : vector<2x8xf32>
    %13 = vector.multi_reduction <maximumf>, %12, %cst_7 [2] : vector<2x8x8xf32> to vector<2x8xf32>
    %14 = vector.shape_cast %13 : vector<2x8xf32> to vector<2x8x1xf32>
    %15 = vector.broadcast %14 : vector<2x8x1xf32> to vector<2x8x8xf32>
    %16 = arith.subf %12, %15 : vector<2x8x8xf32>
    %17 = math.exp %16 : vector<2x8x8xf32>
    %cst_8 = arith.constant dense<0.000000e+00> : vector<2x8xf32>
    %18 = vector.multi_reduction <add>, %17, %cst_8 [2] : vector<2x8x8xf32> to vector<2x8xf32>
    %19 = vector.shape_cast %18 : vector<2x8xf32> to vector<2x8x1xf32>
    %20 = tpu.reciprocal %19 {approx = true} : vector<2x8x1xf32> -> vector<2x8x1xf32>
    %21 = vector.broadcast %20 : vector<2x8x1xf32> to vector<2x8x8xf32>
    %22 = arith.mulf %17, %21 : vector<2x8x8xf32>
    %23 = arith.truncf %22 : vector<2x8x8xf32> to vector<2x8x8xbf16>
    "tpu.trace_start"() <{level = 10 : i32, message = "bqk,bkd->bqd"}> : () -> ()
    %cst_9 = arith.constant dense<0.000000e+00> : vector<2x8x8xf32>
    %24 = tpu.matmul %23, %11, %cst_9 {dimension_numbers = #tpu.dot_dimension_numbers<[2], [1], [1], [2], [0, 0, 0, 1, 1, 2], [0], [0]>} : vector<2x8x8xbf16>, vector<2x8x8xbf16>, vector<2x8x8xf32> -> vector<2x8x8xf32>
    "tpu.trace_stop"() : () -> ()
    %25 = vector.extract_strided_slice %8 {offsets = [0, 0, 8], sizes = [2, 8, 8], strides = [1, 1, 1]} : vector<2x8x96xbf16> to vector<2x8x8xbf16>
    %26 = vector.extract_strided_slice %8 {offsets = [0, 0, 40], sizes = [2, 8, 8], strides = [1, 1, 1]} : vector<2x8x96xbf16> to vector<2x8x8xbf16>
    %27 = vector.extract_strided_slice %8 {offsets = [0, 0, 72], sizes = [2, 8, 8], strides = [1, 1, 1]} : vector<2x8x96xbf16> to vector<2x8x8xbf16>
    "tpu.trace_start"() <{level = 10 : i32, message = "bqd,bkd->bqk"}> : () -> ()
    %cst_10 = arith.constant dense<0.000000e+00> : vector<2x8x8xf32>
    %28 = tpu.matmul %25, %26, %cst_10 {dimension_numbers = #tpu.dot_dimension_numbers<[2], [2], [1], [1], [0, 0, 0, 1, 1, 1], [0], [0]>} : vector<2x8x8xbf16>, vector<2x8x8xbf16>, vector<2x8x8xf32> -> vector<2x8x8xf32>
    "tpu.trace_stop"() : () -> ()
    %cst_11 = arith.constant dense<0xFF800000> : vector<2x8xf32>
    %29 = vector.multi_reduction <maximumf>, %28, %cst_11 [2] : vector<2x8x8xf32> to vector<2x8xf32>
    %30 = vector.shape_cast %29 : vector<2x8xf32> to vector<2x8x1xf32>
    %31 = vector.broadcast %30 : vector<2x8x1xf32> to vector<2x8x8xf32>
    %32 = arith.subf %28, %31 : vector<2x8x8xf32>
    %33 = math.exp %32 : vector<2x8x8xf32>
    %cst_12 = arith.constant dense<0.000000e+00> : vector<2x8xf32>
    %34 = vector.multi_reduction <add>, %33, %cst_12 [2] : vector<2x8x8xf32> to vector<2x8xf32>
    %35 = vector.shape_cast %34 : vector<2x8xf32> to vector<2x8x1xf32>
    %36 = tpu.reciprocal %35 {approx = true} : vector<2x8x1xf32> -> vector<2x8x1xf32>
    %37 = vector.broadcast %36 : vector<2x8x1xf32> to vector<2x8x8xf32>
    %38 = arith.mulf %33, %37 : vector<2x8x8xf32>
    %39 = arith.truncf %38 : vector<2x8x8xf32> to vector<2x8x8xbf16>
    "tpu.trace_start"() <{level = 10 : i32, message = "bqk,bkd->bqd"}> : () -> ()
    %cst_13 = arith.constant dense<0.000000e+00> : vector<2x8x8xf32>
    %40 = tpu.matmul %39, %27, %cst_13 {dimension_numbers = #tpu.dot_dimension_numbers<[2], [1], [1], [2], [0, 0, 0, 1, 1, 2], [0], [0]>} : vector<2x8x8xbf16>, vector<2x8x8xbf16>, vector<2x8x8xf32> -> vector<2x8x8xf32>
    "tpu.trace_stop"() : () -> ()
    %41 = vector.extract_strided_slice %8 {offsets = [0, 0, 16], sizes = [2, 8, 8], strides = [1, 1, 1]} : vector<2x8x96xbf16> to vector<2x8x8xbf16>
    %42 = vector.extract_strided_slice %8 {offsets = [0, 0, 48], sizes = [2, 8, 8], strides = [1, 1, 1]} : vector<2x8x96xbf16> to vector<2x8x8xbf16>
    %43 = vector.extract_strided_slice %8 {offsets = [0, 0, 80], sizes = [2, 8, 8], strides = [1, 1, 1]} : vector<2x8x96xbf16> to vector<2x8x8xbf16>
    "tpu.trace_start"() <{level = 10 : i32, message = "bqd,bkd->bqk"}> : () -> ()
    %cst_14 = arith.constant dense<0.000000e+00> : vector<2x8x8xf32>
    %44 = tpu.matmul %41, %42, %cst_14 {dimension_numbers = #tpu.dot_dimension_numbers<[2], [2], [1], [1], [0, 0, 0, 1, 1, 1], [0], [0]>} : vector<2x8x8xbf16>, vector<2x8x8xbf16>, vector<2x8x8xf32> -> vector<2x8x8xf32>
    "tpu.trace_stop"() : () -> ()
    %cst_15 = arith.constant dense<0xFF800000> : vector<2x8xf32>
    %45 = vector.multi_reduction <maximumf>, %44, %cst_15 [2] : vector<2x8x8xf32> to vector<2x8xf32>
    %46 = vector.shape_cast %45 : vector<2x8xf32> to vector<2x8x1xf32>
    %47 = vector.broadcast %46 : vector<2x8x1xf32> to vector<2x8x8xf32>
    %48 = arith.subf %44, %47 : vector<2x8x8xf32>
    %49 = math.exp %48 : vector<2x8x8xf32>
    %cst_16 = arith.constant dense<0.000000e+00> : vector<2x8xf32>
    %50 = vector.multi_reduction <add>, %49, %cst_16 [2] : vector<2x8x8xf32> to vector<2x8xf32>
    %51 = vector.shape_cast %50 : vector<2x8xf32> to vector<2x8x1xf32>
    %52 = tpu.reciprocal %51 {approx = true} : vector<2x8x1xf32> -> vector<2x8x1xf32>
    %53 = vector.broadcast %52 : vector<2x8x1xf32> to vector<2x8x8xf32>
    %54 = arith.mulf %49, %53 : vector<2x8x8xf32>
    %55 = arith.truncf %54 : vector<2x8x8xf32> to vector<2x8x8xbf16>
    "tpu.trace_start"() <{level = 10 : i32, message = "bqk,bkd->bqd"}> : () -> ()
    %cst_17 = arith.constant dense<0.000000e+00> : vector<2x8x8xf32>
    %56 = tpu.matmul %55, %43, %cst_17 {dimension_numbers = #tpu.dot_dimension_numbers<[2], [1], [1], [2], [0, 0, 0, 1, 1, 2], [0], [0]>} : vector<2x8x8xbf16>, vector<2x8x8xbf16>, vector<2x8x8xf32> -> vector<2x8x8xf32>
    "tpu.trace_stop"() : () -> ()
    %57 = vector.extract_strided_slice %8 {offsets = [0, 0, 24], sizes = [2, 8, 8], strides = [1, 1, 1]} : vector<2x8x96xbf16> to vector<2x8x8xbf16>
    %58 = vector.extract_strided_slice %8 {offsets = [0, 0, 56], sizes = [2, 8, 8], strides = [1, 1, 1]} : vector<2x8x96xbf16> to vector<2x8x8xbf16>
    %59 = vector.extract_strided_slice %8 {offsets = [0, 0, 88], sizes = [2, 8, 8], strides = [1, 1, 1]} : vector<2x8x96xbf16> to vector<2x8x8xbf16>
    "tpu.trace_start"() <{level = 10 : i32, message = "bqd,bkd->bqk"}> : () -> ()
    %cst_18 = arith.constant dense<0.000000e+00> : vector<2x8x8xf32>
    %60 = tpu.matmul %57, %58, %cst_18 {dimension_numbers = #tpu.dot_dimension_numbers<[2], [2], [1], [1], [0, 0, 0, 1, 1, 1], [0], [0]>} : vector<2x8x8xbf16>, vector<2x8x8xbf16>, vector<2x8x8xf32> -> vector<2x8x8xf32>
    "tpu.trace_stop"() : () -> ()
    %cst_19 = arith.constant dense<0xFF800000> : vector<2x8xf32>
    %61 = vector.multi_reduction <maximumf>, %60, %cst_19 [2] : vector<2x8x8xf32> to vector<2x8xf32>
    %62 = vector.shape_cast %61 : vector<2x8xf32> to vector<2x8x1xf32>
    %63 = vector.broadcast %62 : vector<2x8x1xf32> to vector<2x8x8xf32>
    %64 = arith.subf %60, %63 : vector<2x8x8xf32>
    %65 = math.exp %64 : vector<2x8x8xf32>
    %cst_20 = arith.constant dense<0.000000e+00> : vector<2x8xf32>
    %66 = vector.multi_reduction <add>, %65, %cst_20 [2] : vector<2x8x8xf32> to vector<2x8xf32>
    %67 = vector.shape_cast %66 : vector<2x8xf32> to vector<2x8x1xf32>
    %68 = tpu.reciprocal %67 {approx = true} : vector<2x8x1xf32> -> vector<2x8x1xf32>
    %69 = vector.broadcast %68 : vector<2x8x1xf32> to vector<2x8x8xf32>
    %70 = arith.mulf %65, %69 : vector<2x8x8xf32>
    %71 = arith.truncf %70 : vector<2x8x8xf32> to vector<2x8x8xbf16>
    "tpu.trace_start"() <{level = 10 : i32, message = "bqk,bkd->bqd"}> : () -> ()
    %cst_21 = arith.constant dense<0.000000e+00> : vector<2x8x8xf32>
    %72 = tpu.matmul %71, %59, %cst_21 {dimension_numbers = #tpu.dot_dimension_numbers<[2], [1], [1], [2], [0, 0, 0, 1, 1, 2], [0], [0]>} : vector<2x8x8xbf16>, vector<2x8x8xbf16>, vector<2x8x8xf32> -> vector<2x8x8xf32>
    "tpu.trace_stop"() : () -> ()
    %73 = tpu.concatenate %24, %40, %56, %72 in 2 : vector<2x8x8xf32>, vector<2x8x8xf32>, vector<2x8x8xf32>, vector<2x8x8xf32> -> vector<2x8x32xf32>
    %74 = vector.shape_cast %73 : vector<2x8x32xf32> to vector<16x32xf32>
    %75 = arith.truncf %74 : vector<16x32xf32> to vector<16x32xbf16>
    %c0_22 = arith.constant 0 : index
    %c0_23 = arith.constant 0 : index
    %76 = vector.load %arg4[%c0_22, %c0_23] : memref<32x32xbf16, #tpu.memory_space<vmem>>, vector<32x32xbf16>
    %cst_24 = arith.constant dense<0.000000e+00> : vector<16x32xf32>
    %77 = tpu.matmul %75, %76, %cst_24 {dimension_numbers = #tpu.dot_dimension_numbers<[1], [0], [0], [1], [0, 0, 1, 1], [], []>} : vector<16x32xbf16>, vector<32x32xbf16>, vector<16x32xf32> -> vector<16x32xf32>
    %c0_25 = arith.constant 0 : index
    %c0_26 = arith.constant 0 : index
    %78 = vector.load %arg5[%c0_25, %c0_26] : memref<1x32xf32, #tpu.memory_space<vmem>>, vector<1x32xf32>
    %79 = vector.broadcast %78 : vector<1x32xf32> to vector<16x32xf32>
    %80 = arith.addf %77, %79 : vector<16x32xf32>
    %81 = vector.shape_cast %80 : vector<16x32xf32> to vector<2x8x32xf32>
    %c0_27 = arith.constant 0 : index
    %c0_28 = arith.constant 0 : index
    %c0_29 = arith.constant 0 : index
    %82 = vector.load %arg6[%c0_27, %c0_28, %c0_29] : memref<2x8x32xf32, #tpu.memory_space<vmem>>, vector<2x8x32xf32>
    tpu.vector_store %arg6[%c0_27, %c0_28, %c0_29], %81 {strides = array<i32>} : memref<2x8x32xf32, #tpu.memory_space<vmem>>, vector<2x8x32xf32>,
    return
  }
  func.func @transform_0(%arg0: i32) -> (i32, i32, i32) {
    %c0_i32 = arith.constant 0 : i32
    %c0_i32_0 = arith.constant 0 : i32
    %c0_i32_1 = arith.constant 0 : i32
    return %arg0, %c0_i32, %c0_i32_0 : i32, i32, i32
  }
  func.func @transform_1(%arg0: i32) -> (i32, i32) {
    %c0_i32 = arith.constant 0 : i32
    %c0_i32_0 = arith.constant 0 : i32
    %c0_i32_1 = arith.constant 0 : i32
    return %c0_i32, %c0_i32_0 : i32, i32
  }
  func.func @transform_2(%arg0: i32) -> (i32, i32) {
    %c0_i32 = arith.constant 0 : i32
    %c0_i32_0 = arith.constant 0 : i32
    %c0_i32_1 = arith.constant 0 : i32
    return %c0_i32, %c0_i32_0 : i32, i32
  }
  func.func @transform_3(%arg0: i32) -> (i32, i32) {
    %c0_i32 = arith.constant 0 : i32
    %c0_i32_0 = arith.constant 0 : i32
    %c0_i32_1 = arith.constant 0 : i32
    return %c0_i32, %c0_i32_0 : i32, i32
  }
  func.func @transform_4(%arg0: i32) -> (i32, i32) {
    %c0_i32 = arith.constant 0 : i32
    %c0_i32_0 = arith.constant 0 : i32
    %c0_i32_1 = arith.constant 0 : i32
    return %c0_i32, %c0_i32_0 : i32, i32
  }
  func.func @transform_5(%arg0: i32) -> (i32, i32, i32) {
    %c0_i32 = arith.constant 0 : i32
    %c0_i32_0 = arith.constant 0 : i32
    %c0_i32_1 = arith.constant 0 : i32
    return %arg0, %c0_i32, %c0_i32_0 : i32, i32, i32
  }
}

module attributes {stable_mosaic.version = 11 : i64} {
  func.func @mha_kernel(%arg0: i32, %arg1: memref<2x8x32xbf16, #tpu.memory_space<vmem>>, %arg2: memref<32x96xbf16, #tpu.memory_space<vmem>>, %arg3: memref<1x96xf32, #tpu.memory_space<vmem>>, %arg4: memref<32x32xbf16, #tpu.memory_space<vmem>>, %arg5: memref<1x32xf32, #tpu.memory_space<vmem>>, %arg6: memref<2x8x32xf32, #tpu.memory_space<vmem>>) attributes {dimension_semantics = [#tpu.dimension_semantics<parallel>], iteration_bounds = array<i64: 1>, scalar_prefetch = 0 : i64, scratch_operands = 0 : i64, tpu.core_type = #tpu.core_type<tc>, window_params = [{transform_indices = @transform_0, window_bounds = array<i64: 2, 8, 32>}, {pipeline_mode = #tpu.pipeline_mode<synchronous>, transform_indices = @transform_1, window_bounds = array<i64: 32, 96>}, {pipeline_mode = #tpu.pipeline_mode<synchronous>, transform_indices = @transform_2, window_bounds = array<i64: 1, 96>}, {pipeline_mode = #tpu.pipeline_mode<synchronous>, transform_indices = @transform_3, window_bounds = array<i64: 32, 32>}, {pipeline_mode = #tpu.pipeline_mode<synchronous>, transform_indices = @transform_4, window_bounds = array<i64: 1, 32>}, {transform_indices = @transform_5, window_bounds = array<i64: 2, 8, 32>}]} {
    %c0 = arith.constant 0 : index
    %c0_0 = arith.constant 0 : index
    %c0_1 = arith.constant 0 : index
    %0 = vector.load %arg1[%c0, %c0_0, %c0_1] : memref<2x8x32xbf16, #tpu.memory_space<vmem>>, vector<2x8x32xbf16>
    %1 = vector.shape_cast %0 : vector<2x8x32xbf16> to vector<16x32xbf16>
    %c0_2 = arith.constant 0 : index
    %c0_3 = arith.constant 0 : index
    %2 = vector.load %arg2[%c0_2, %c0_3] : memref<32x96xbf16, #tpu.memory_space<vmem>>, vector<32x96xbf16>
    %cst = arith.constant dense<0.000000e+00> : vector<16x96xf32>
    %3 = tpu.matmul %1, %2, %cst {dimension_numbers = #tpu.dot_dimension_numbers<[1], [0], [0], [1], [0, 0, 1, 1], [], []>} : vector<16x32xbf16>, vector<32x96xbf16>, vector<16x96xf32> -> vector<16x96xf32>
    %c0_4 = arith.constant 0 : index
    %c0_5 = arith.constant 0 : index
    %4 = vector.load %arg3[%c0_4, %c0_5] : memref<1x96xf32, #tpu.memory_space<vmem>>, vector<1x96xf32>
    %5 = vector.broadcast %4 : vector<1x96xf32> to vector<16x96xf32>
    %6 = arith.addf %3, %5 : vector<16x96xf32>
    %7 = arith.truncf %6 : vector<16x96xf32> to vector<16x96xbf16>
    %8 = vector.shape_cast %7 : vector<16x96xbf16> to vector<2x8x96xbf16>
    %9 = vector.extract_strided_slice %8 {offsets = [0, 0, 0], sizes = [2, 8, 8], strides = [1, 1, 1]} : vector<2x8x96xbf16> to vector<2x8x8xbf16>
    %10 = vector.extract_strided_slice %8 {offsets = [0, 0, 32], sizes = [2, 8, 8], strides = [1, 1, 1]} : vector<2x8x96xbf16> to vector<2x8x8xbf16>
    %11 = vector.extract_strided_slice %8 {offsets = [0, 0, 64], sizes = [2, 8, 8], strides = [1, 1, 1]} : vector<2x8x96xbf16> to vector<2x8x8xbf16>
    "tpu.trace_start"() <{level = 10 : i32, message = "bqd,bkd->bqk"}> : () -> ()
    %cst_6 = arith.constant dense<0.000000e+00> : vector<2x8x8xf32>
    %12 = tpu.matmul %9, %10, %cst_6 {dimension_numbers = #tpu.dot_dimension_numbers<[2], [2], [1], [1], [0, 0, 0, 1, 1, 1], [0], [0]>} : vector<2x8x8xbf16>, vector<2x8x8xbf16>, vector<2x8x8xf32> -> vector<2x8x8xf32>
    "tpu.trace_stop"() : () -> ()
    %cst_7 = arith.constant dense<0xFF800000> : vector<2x8xf32>
    %13 = vector.multi_reduction <maximumf>, %12, %cst_7 [2] : vector<2x8x8xf32> to vector<2x8xf32>
    %14 = vector.shape_cast %13 : vector<2x8xf32> to vector<2x8x1xf32>
    %15 = vector.broadcast %14 : vector<2x8x1xf32> to vector<2x8x8xf32>
    %16 = arith.subf %12, %15 : vector<2x8x8xf32>
    %17 = math.exp %16 : vector<2x8x8xf32>
    %cst_8 = arith.constant dense<0.000000e+00> : vector<2x8xf32>
    %18 = vector.multi_reduction <add>, %17, %cst_8 [2] : vector<2x8x8xf32> to vector<2x8xf32>
    %19 = vector.shape_cast %18 : vector<2x8xf32> to vector<2x8x1xf32>
    %20 = tpu.reciprocal %19 {approx = true} : vector<2x8x1xf32> -> vector<2x8x1xf32>
    %21 = vector.broadcast %20 : vector<2x8x1xf32> to vector<2x8x8xf32>
    %22 = arith.mulf %17, %21 : vector<2x8x8xf32>
    %23 = arith.truncf %22 : vector<2x8x8xf32> to vector<2x8x8xbf16>
    "tpu.trace_start"() <{level = 10 : i32, message = "bqk,bkd->bqd"}> : () -> ()
    %cst_9 = arith.constant dense<0.000000e+00> : vector<2x8x8xf32>
    %24 = tpu.matmul %23, %11, %cst_9 {dimension_numbers = #tpu.dot_dimension_numbers<[2], [1], [1], [2], [0, 0, 0, 1, 1, 2], [0], [0]>} : vector<2x8x8xbf16>, vector<2x8x8xbf16>, vector<2x8x8xf32> -> vector<2x8x8xf32>
    "tpu.trace_stop"() : () -> ()
    %25 = vector.extract_strided_slice %8 {offsets = [0, 0, 8], sizes = [2, 8, 8], strides = [1, 1, 1]} : vector<2x8x96xbf16> to vector<2x8x8xbf16>
    %26 = vector.extract_strided_slice %8 {offsets = [0, 0, 40], sizes = [2, 8, 8], strides = [1, 1, 1]} : vector<2x8x96xbf16> to vector<2x8x8xbf16>
    %27 = vector.extract_strided_slice %8 {offsets = [0, 0, 72], sizes = [2, 8, 8], strides = [1, 1, 1]} : vector<2x8x96xbf16> to vector<2x8x8xbf16>
    "tpu.trace_start"() <{level = 10 : i32, message = "bqd,bkd->bqk"}> : () -> ()
    %cst_10 = arith.constant dense<0.000000e+00> : vector<2x8x8xf32>
    %28 = tpu.matmul %25, %26, %cst_10 {dimension_numbers = #tpu.dot_dimension_numbers<[2], [2], [1], [1], [0, 0, 0, 1, 1, 1], [0], [0]>} : vector<2x8x8xbf16>, vector<2x8x8xbf16>, vector<2x8x8xf32> -> vector<2x8x8xf32>
    "tpu.trace_stop"() : () -> ()
    %cst_11 = arith.constant dense<0xFF800000> : vector<2x8xf32>
    %29 = vector.multi_reduction <maximumf>, %28, %cst_11 [2] : vector<2x8x8xf32> to vector<2x8xf32>
    %30 = vector.shape_cast %29 : vector<2x8xf32> to vector<2x8x1xf32>
    %31 = vector.broadcast %30 : vector<2x8x1xf32> to vector<2x8x8xf32>
    %32 = arith.subf %28, %31 : vector<2x8x8xf32>
    %33 = math.exp %32 : vector<2x8x8xf32>
    %cst_12 = arith.constant dense<0.000000e+00> : vector<2x8xf32>
    %34 = vector.multi_reduction <add>, %33, %cst_12 [2] : vector<2x8x8xf32> to vector<2x8xf32>
    %35 = vector.shape_cast %34 : vector<2x8xf32> to vector<2x8x1xf32>
    %36 = tpu.reciprocal %35 {approx = true} : vector<2x8x1xf32> -> vector<2x8x1xf32>
    %37 = vector.broadcast %36 : vector<2x8x1xf32> to vector<2x8x8xf32>
    %38 = arith.mulf %33, %37 : vector<2x8x8xf32>
    %39 = arith.truncf %38 : vector<2x8x8xf32> to vector<2x8x8xbf16>
    "tpu.trace_start"() <{level = 10 : i32, message = "bqk,bkd->bqd"}> : () -> ()
    %cst_13 = arith.constant dense<0.000000e+00> : vector<2x8x8xf32>
    %40 = tpu.matmul %39, %27, %cst_13 {dimension_numbers = #tpu.dot_dimension_numbers<[2], [1], [1], [2], [0, 0, 0, 1, 1, 2], [0], [0]>} : vector<2x8x8xbf16>, vector<2x8x8xbf16>, vector<2x8x8xf32> -> vector<2x8x8xf32>
    "tpu.trace_stop"() : () -> ()
    %41 = vector.extract_strided_slice %8 {offsets = [0, 0, 16], sizes = [2, 8, 8], strides = [1, 1, 1]} : vector<2x8x96xbf16> to vector<2x8x8xbf16>
    %42 = vector.extract_strided_slice %8 {offsets = [0, 0, 48], sizes = [2, 8, 8], strides = [1, 1, 1]} : vector<2x8x96xbf16> to vector<2x8x8xbf16>
    %43 = vector.extract_strided_slice %8 {offsets = [0, 0, 80], sizes = [2, 8, 8], strides = [1, 1, 1]} : vector<2x8x96xbf16> to vector<2x8x8xbf16>
    "tpu.trace_start"() <{level = 10 : i32, message = "bqd,bkd->bqk"}> : () -> ()
    %cst_14 = arith.constant dense<0.000000e+00> : vector<2x8x8xf32>
    %44 = tpu.matmul %41, %42, %cst_14 {dimension_numbers = #tpu.dot_dimension_numbers<[2], [2], [1], [1], [0, 0, 0, 1, 1, 1], [0], [0]>} : vector<2x8x8xbf16>, vector<2x8x8xbf16>, vector<2x8x8xf32> -> vector<2x8x8xf32>
    "tpu.trace_stop"() : () -> ()
    %cst_15 = arith.constant dense<0xFF800000> : vector<2x8xf32>
    %45 = vector.multi_reduction <maximumf>, %44, %cst_15 [2] : vector<2x8x8xf32> to vector<2x8xf32>
    %46 = vector.shape_cast %45 : vector<2x8xf32> to vector<2x8x1xf32>
    %47 = vector.broadcast %46 : vector<2x8x1xf32> to vector<2x8x8xf32>
    %48 = arith.subf %44, %47 : vector<2x8x8xf32>
    %49 = math.exp %48 : vector<2x8x8xf32>
    %cst_16 = arith.constant dense<0.000000e+00> : vector<2x8xf32>
    %50 = vector.multi_reduction <add>, %49, %cst_16 [2] : vector<2x8x8xf32> to vector<2x8xf32>
    %51 = vector.shape_cast %50 : vector<2x8xf32> to vector<2x8x1xf32>
    %52 = tpu.reciprocal %51 {approx = true} : vector<2x8x1xf32> -> vector<2x8x1xf32>
    %53 = vector.broadcast %52 : vector<2x8x1xf32> to vector<2x8x8xf32>
    %54 = arith.mulf %49, %53 : vector<2x8x8xf32>
    %55 = arith.truncf %54 : vector<2x8x8xf32> to vector<2x8x8xbf16>
    "tpu.trace_start"() <{level = 10 : i32, message = "bqk,bkd->bqd"}> : () -> ()
    %cst_17 = arith.constant dense<0.000000e+00> : vector<2x8x8xf32>
    %56 = tpu.matmul %55, %43, %cst_17 {dimension_numbers = #tpu.dot_dimension_numbers<[2], [1], [1], [2], [0, 0, 0, 1, 1, 2], [0], [0]>} : vector<2x8x8xbf16>, vector<2x8x8xbf16>, vector<2x8x8xf32> -> vector<2x8x8xf32>
    "tpu.trace_stop"() : () -> ()
    %57 = vector.extract_strided_slice %8 {offsets = [0, 0, 24], sizes = [2, 8, 8], strides = [1, 1, 1]} : vector<2x8x96xbf16> to vector<2x8x8xbf16>
    %58 = vector.extract_strided_slice %8 {offsets = [0, 0, 56], sizes = [2, 8, 8], strides = [1, 1, 1]} : vector<2x8x96xbf16> to vector<2x8x8xbf16>
    %59 = vector.extract_strided_slice %8 {offsets = [0, 0, 88], sizes = [2, 8, 8], strides = [1, 1, 1]} : vector<2x8x96xbf16> to vector<2x8x8xbf16>
    "tpu.trace_start"() <{level = 10 : i32, message = "bqd,bkd->bqk"}> : () -> ()
    %cst_18 = arith.constant dense<0.000000e+00> : vector<2x8x8xf32>
    %60 = tpu.matmul %57, %58, %cst_18 {dimension_numbers = #tpu.dot_dimension_numbers<[2], [2], [1], [1], [0, 0, 0, 1, 1, 1], [0], [0]>} : vector<2x8x8xbf16>, vector<2x8x8xbf16>, vector<2x8x8xf32> -> vector<2x8x8xf32>
    "tpu.trace_stop"() : () -> ()
    %cst_19 = arith.constant dense<0xFF800000> : vector<2x8xf32>
    %61 = vector.multi_reduction <maximumf>, %60, %cst_19 [2] : vector<2x8x8xf32> to vector<2x8xf32>
    %62 = vector.shape_cast %61 : vector<2x8xf32> to vector<2x8x1xf32>
    %63 = vector.broadcast %62 : vector<2x8x1xf32> to vector<2x8x8xf32>
    %64 = arith.subf %60, %63 : vector<2x8x8xf32>
    %65 = math.exp %64 : vector<2x8x8xf32>
    %cst_20 = arith.constant dense<0.000000e+00> : vector<2x8xf32>
    %66 = vector.multi_reduction <add>, %65, %cst_20 [2] : vector<2x8x8xf32> to vector<2x8xf32>
    %67 = vector.shape_cast %66 : vector<2x8xf32> to vector<2x8x1xf32>
    %68 = tpu.reciprocal %67 {approx = true} : vector<2x8x1xf32> -> vector<2x8x1xf32>
    %69 = vector.broadcast %68 : vector<2x8x1xf32> to vector<2x8x8xf32>
    %70 = arith.mulf %65, %69 : vector<2x8x8xf32>
    %71 = arith.truncf %70 : vector<2x8x8xf32> to vector<2x8x8xbf16>
    "tpu.trace_start"() <{level = 10 : i32, message = "bqk,bkd->bqd"}> : () -> ()
    %cst_21 = arith.constant dense<0.000000e+00> : vector<2x8x8xf32>
    %72 = tpu.matmul %71, %59, %cst_21 {dimension_numbers = #tpu.dot_dimension_numbers<[2], [1], [1], [2], [0, 0, 0, 1, 1, 2], [0], [0]>} : vector<2x8x8xbf16>, vector<2x8x8xbf16>, vector<2x8x8xf32> -> vector<2x8x8xf32>
    "tpu.trace_stop"() : () -> ()
    %73 = tpu.concatenate %24, %40, %56, %72 in 2 : vector<2x8x8xf32>, vector<2x8x8xf32>, vector<2x8x8xf32>, vector<2x8x8xf32> -> vector<2x8x32xf32>
    %74 = vector.shape_cast %73 : vector<2x8x32xf32> to vector<16x32xf32>
    %75 = arith.truncf %74 : vector<16x32xf32> to vector<16x32xbf16>
    %c0_22 = arith.constant 0 : index
    %c0_23 = arith.constant 0 : index
    %76 = vector.load %arg4[%c0_22, %c0_23] : memref<32x32xbf16, #tpu.memory_space<vmem>>, vector<32x32xbf16>
    %cst_24 = arith.constant dense<0.000000e+00> : vector<16x32xf32>
    %77 = tpu.matmul %75, %76, %cst_24 {dimension_numbers = #tpu.dot_dimension_numbers<[1], [0], [0], [1], [0, 0, 1, 1], [], []>} : vector<16x32xbf16>, vector<32x32xbf16>, vector<16x32xf32> -> vector<16x32xf32>
    %c0_25 = arith.constant 0 : index
    %c0_26 = arith.constant 0 : index
    %78 = vector.load %arg5[%c0_25, %c0_26] : memref<1x32xf32, #tpu.memory_space<vmem>>, vector<1x32xf32>
    %79 = vector.broadcast %78 : vector<1x32xf32> to vector<16x32xf32>
    %80 = arith.addf %77, %79 : vector<16x32xf32>
    %81 = vector.shape_cast %80 : vector<16x32xf32> to vector<2x8x32xf32>
    %c0_27 = arith.constant 0 : index
    %c0_28 = arith.constant 0 : index
    %c0_29 = arith.constant 0 : index
    %82 = vector.load %arg6[%c0_27, %c0_28, %c0_29] : memref<2x8x32xf32, #tpu.memory_space<vmem>>, vector<2x8x32xf32>
    tpu.vector_store %arg6[%c0_27, %c0_28, %c0_29], %81 {strides = array<i32>} : memref<2x8x32xf32, #tpu.memory_space<vmem>>, vector<2x8x32xf32>,
    return
  }
  func.func @transform_0(%arg0: i32) -> (i32, i32, i32) {
    %c0_i32 = arith.constant 0 : i32
    %c0_i32_0 = arith.constant 0 : i32
    %c0_i32_1 = arith.constant 0 : i32
    return %arg0, %c0_i32, %c0_i32_0 : i32, i32, i32
  }
  func.func @transform_1(%arg0: i32) -> (i32, i32) {
    %c0_i32 = arith.constant 0 : i32
    %c0_i32_0 = arith.constant 0 : i32
    %c0_i32_1 = arith.constant 0 : i32
    return %c0_i32, %c0_i32_0 : i32, i32
  }
  func.func @transform_2(%arg0: i32) -> (i32, i32) {
    %c0_i32 = arith.constant 0 : i32
    %c0_i32_0 = arith.constant 0 : i32
    %c0_i32_1 = arith.constant 0 : i32
    return %c0_i32, %c0_i32_0 : i32, i32
  }
  func.func @transform_3(%arg0: i32) -> (i32, i32) {
    %c0_i32 = arith.constant 0 : i32
    %c0_i32_0 = arith.constant 0 : i32
    %c0_i32_1 = arith.constant 0 : i32
    return %c0_i32, %c0_i32_0 : i32, i32
  }
  func.func @transform_4(%arg0: i32) -> (i32, i32) {
    %c0_i32 = arith.constant 0 : i32
    %c0_i32_0 = arith.constant 0 : i32
    %c0_i32_1 = arith.constant 0 : i32
    return %c0_i32, %c0_i32_0 : i32, i32
  }
  func.func @transform_5(%arg0: i32) -> (i32, i32, i32) {
    %c0_i32 = arith.constant 0 : i32
    %c0_i32_0 = arith.constant 0 : i32
    %c0_i32_1 = arith.constant 0 : i32
    return %arg0, %c0_i32, %c0_i32_0 : i32, i32, i32
  }
}

</mosaic_0001>

<bundles_post_ra>
// kernel: tpu_custom_call.1
= control target key start
LH: loop header
LB: loop body
LE: loop exit
PB: predicated region body
PF: predicated region fallthrough
CT: control target
= control target key end

     0   :  { %10 = vsyncpa [#allocation3], 0  ;;  %s1768_s0 = inlined_call_operand.hbm [shape: bf16[2,8,32], index: 0, kind: input, shape index: {}]   ;;  %s1769_s1 = inlined_call_operand.hbm [shape: bf16[32,96], index: 1, kind: input, shape index: {}]   ;;  %s1770_s2 = inlined_call_operand.vmem [shape: f32[1,96], index: 2, kind: input, shape index: {}]   ;;  %s1771_s3 = inlined_call_operand.hbm [shape: bf16[32,32], index: 3, kind: input, shape index: {}]   ;;  %s1772_s4 = inlined_call_operand.vmem [shape: f32[1,32], index: 4, kind: input, shape index: {}]   ;;  %s1773_s5 = inlined_call_operand.hbm [shape: f32[2,8,32], index: 5, kind: output, shape index: {}]  }
   0x1   :  { %11 = vsyncpa [#allocation6], 0 }
   0x2   :  { %12 = vsyncpa [#allocation4], 0  ;;  %s1489_s18 = smov [#allocation5]   ;;  %s1490_s20 = smov [#allocation2]  }
   0x3   :  { %s30_s19 = sshll.u32 %s1489_s18, 4  ;;  %s18_s21 = sshll.u32 %s1490_s20, 4  ;;  %s31_s19 = int_to_ptr.vmem [resolvable:$true] %s30_s19  ;;  %s1541_s21 = int_to_ptr.vmem [resolvable:$true] %s18_s21 }
   0x4   :  { %s1395_s24 = scalar_lea.hbm %s1769_s1, 256 }
   0x5   :  { %p1396_p0 = scmp.ne.s32.totalorder %s1769_s1, %s1395_s24  ;;  %p1399_p1 = scmp.lt.u32.totalorder %s1395_s24, %s1769_s1 }
   0x7   :  { %p1401_p2 = pnand %p1399_p1, %p1396_p0 }
   0x9   :  { %1404 = shalt.err (!%p1401_p2)
}
   0xa   :  { %s1405_s29 = scalar_lea.vmem %s31_s19, 256  ;;  %p1410_p4 = scmp.lt.s32.totalorder %s31_s19, %s31_s19 }
   0xb   :  { %p1406_p3 = scmp.ne.s32.totalorder %s31_s19, %s1405_s29  ;;  %p1411_p5 = scmp.lt.s32.totalorder %s1405_s29, %s1405_s29 }
   0xd   :  { %p1412_p6 = por %p1411_p5, %p1410_p4 }
   0xf   :  { %p1413_p7 = pnand %p1412_p6, %p1406_p3 }
  0x11   :  { %1416 = shalt.err (!%p1413_p7)
}
  0x12   :  { %s1491_s30 = smov 64   ;;  %s1492_s6 = smov 4  }
  0x13   :  { %36 = dma.hbm_to_vmem [thread:$0]  %s1769_s1, 256, %s31_s19, [#allocation6], %s1491_s30, %s1491_s30, %s1492_s6  }
  0x14   :  { %s1417_s11 = scalar_lea.hbm %s1768_s0, 128 }
  0x15   :  { %p1418_p8 = scmp.ne.s32.totalorder %s1768_s0, %s1417_s11  ;;  %p1421_p9 = scmp.lt.u32.totalorder %s1417_s11, %s1768_s0 }
  0x17   :  { %p1423_p10 = pnand %p1421_p9, %p1418_p8 }
  0x19   :  { %1426 = shalt.err (!%p1423_p10)
}
  0x1a   :  { %s1427_s16 = scalar_lea.vmem %s1541_s21, 128  ;;  %p1432_p12 = scmp.lt.s32.totalorder %s1541_s21, %s1541_s21 }
  0x1b   :  { %p1428_p11 = scmp.ne.s32.totalorder %s1541_s21, %s1427_s16  ;;  %p1433_p13 = scmp.lt.s32.totalorder %s1427_s16, %s1427_s16 }
  0x1d   :  { %p1434_p0 = por %p1433_p13, %p1432_p12 }
  0x1f   :  { %p1435_p1 = pnand %p1434_p0, %p1428_p11 }
  0x21   :  { %1438 = shalt.err (!%p1435_p1)
}
  0x22   :  { %24 = dma.hbm_to_vmem [thread:$0]  %s1768_s0, 128, %s1541_s21, [#allocation3], %s1491_s30, %s1491_s30, %s1492_s6  }
  0x23   :  { %s1493_s18 = smov [#allocation7]   ;;  %s1439_s23 = scalar_lea.hbm %s1771_s3, 256 }
  0x24   :  { %s44_s19 = sshll.u32 %s1493_s18, 4  ;;  %p1440_p2 = scmp.ne.s32.totalorder %s1771_s3, %s1439_s23  ;;  %s45_s19 = int_to_ptr.vmem [resolvable:$true] %s44_s19 }
  0x25   :  { %p1443_p3 = scmp.lt.u32.totalorder %s1439_s23, %s1771_s3 }
  0x27   :  { %p1445_p4 = pnand %p1443_p3, %p1440_p2 }
  0x29   :  { %1448 = shalt.err (!%p1445_p4)
}
  0x2a   :  { %s1449_s28 = scalar_lea.vmem %s45_s19, 256  ;;  %p1454_p6 = scmp.lt.s32.totalorder %s45_s19, %s45_s19 }
  0x2b   :  { %p1450_p5 = scmp.ne.s32.totalorder %s45_s19, %s1449_s28  ;;  %p1455_p7 = scmp.lt.s32.totalorder %s1449_s28, %s1449_s28 }
  0x2d   :  { %p1456_p8 = por %p1455_p7, %p1454_p6 }
  0x2f   :  { %p1457_p9 = pnand %p1456_p8, %p1450_p5 }
  0x31   :  { %1460 = shalt.err (!%p1457_p9)
}
  0x32   :  { %50 = dma.hbm_to_vmem [thread:$0]  %s1771_s3, 256, %s45_s19, [#allocation6], %s1491_s30, %s1491_s30, %s1492_s6  }
  0x33   :  { %1483 = dma.done.wait [#allocation3], 128  }
  0x34   :  { %1484 = vsyncadd [#allocation3], 4294967168 }
  0x35   :  { %1485 = dma.done.wait [#allocation6], 512  }
  0x36   :  { %1486 = vsyncadd [#allocation6], 4294966784  ;;  %v1494_v0 = vmov 0.0   ;;  %vm1495_vm0 = vmmov 0   ;;  %v1358_v1 = vld [vmem:[#allocation5] sm:$0xff]   ;;  %v1359_v2 = vld [vmem:[#allocation5 + $0x8] sm:$0xff]  }
  0x37   :  { %1209 = vmatprep.subr.bf16.mxu0 %v1494_v0  ;;  %1213 = vmatprep.mubr.msk.bf16.mxu0 %vm1495_vm0, %v1494_v0  ;;  %v1360_v3 = vld [vmem:[#allocation2] sm:$0xff]   ;;  %vm93_vm1 = vcmask 261120   ;;  %s1496_s6 = smov 96   ;;  %vm146_vm2 = vcmask 64512   ;;  %vm270_vm3 = vcmask 1043456   ;;  %s1499_s7 = smov 56  }
  0x38   :  { %1217 = vmatprep.subr.bf16.mxu1 %v1494_v0  ;;  %1219 = vmatprep.mubr.msk.bf16.mxu1 %vm1495_vm0, %v1494_v0  ;;  %v1142_v4 = vld [vmem:[%s1770_s2] ss:$0 sm:$0xff]  ;;  %s1497_s2 = smov 88   ;;  %s1500_s8 = smov 80   ;;  %vm1048_vm4 = vcmask 130048   ;;  %vm1051_vm5 = vcmask 195584  }
  0x39   :  { %1210 = vmatpush3.bf16.msra.mxu0 %v1358_v1  ;;  %s1501_s9 = smov 112   ;;  %s1502_s10 = smov 48  }
  0x3a   :  { %1211 = vmatprep.subr.bf16.mxu0 %v1494_v0  ;;  %s1503_s11 = smov 72   ;;  %s1504_s12 = smov 104  }
  0x3b   :  { %s1505_s13 = smov 40   ;;  %s1506_s14 = smov 8  }
  0x3c   :  { %s1507_s15 = smov 16   ;;  %s1508_s16 = smov 24  }
  0x3d   :  { %1212 = vmatpush3.bf16.msra.mxu0 %v1359_v2  ;;  %s1509_s18 = smov [#allocation8]  }
  0x3e   :  { %1223 = vmatprep.subr.bf16.mxu0 %v1494_v0  ;;  %s1129_s19 = sshll.u32 %s1509_s18, 4  ;;  %s1130_s19 = int_to_ptr.vmem [resolvable:$true] %s1129_s19 }
  0x3f   :  { %s1461_s20 = scalar_lea.vmem %s1130_s19, 256  ;;  %p1466_p11 = scmp.lt.s32.totalorder %s1130_s19, %s1130_s19 }
  0x40   :  { %1214 = vmatmul.mubr.msk.bf16.vlgmr.msra.gmra.mrb[0].mxu0 %vm93_vm1, %v1360_v3  ;;  %p1462_p10 = scmp.ne.s32.totalorder %s1130_s19, %s1461_s20  ;;  %p1467_p12 = scmp.lt.s32.totalorder %s1461_s20, %s1461_s20 }
  0x41   :  { %1225 = vmatprep.mubr.msk.bf16.mxu0 %vm1495_vm0, %v1494_v0 }
  0x42   :  { %p1468_p13 = por %p1467_p12, %p1466_p11 }
  0x44   :  { %p1469_p0 = pnand %p1468_p13, %p1462_p10 }
 0x113   :  { %v131_v5 = vpop.f32.mrb[0].mxu0 }
 0x114   :  { %v132_v6 = vadd.f32 %v1142_v4, %v131_v5  ;;  %v1215_v7 = vpop.f32.mrb[1].mxu0 }
 0x115   :  { %v134_v8 = vpop.f32.mrb[2].mxu0 }
 0x116   :  { %v1607_v9 = vpack.c.bf16 %v132_v6, %v132_v6  ;;  %v135_v10 = vadd.f32 %v1142_v4, %v134_v8  ;;  %v1216_v11 = vpop.f32.mrb[3].mxu0 }
 0x118   :  { %144 = vrot.lane.b32.xlu0 %v1607_v9, %s1496_s6  ;;  %v1610_v12 = vpack.c.bf16 %v135_v10, %v135_v10 }
 0x11c   :  { %193 = vrot.lane.b32.xlu0 %v1610_v12, %s1496_s6 }
 0x18a   :  { %v145_v13 = vpop.permute.xlu0 %144 }
 0x18b   :  { %v151_v14 = vsel %vm146_vm2, %v145_v13, 0 }
 0x18c   :  { %1218 = vmatpush3.bf16.xpose.msra.mxu1 %v151_v14 }
 0x18d   :  { %1229 = vmatprep.subr.bf16.mxu1 %v1494_v0 }
 0x18e   :  { %v194_v15 = vpop.permute.xlu0 %193 }
 0x18f   :  { %v199_v16 = vsel %vm146_vm2, %v194_v15, 0 }
 0x190   :  { %1224 = vmatpush3.bf16.xpose.msra.mxu0 %v199_v16 }
 0x191   :  { %1235 = vmatprep.subr.bf16.mxu0 %v1494_v0 }
 0x193   :  { %1220 = vmatmul.mubr.msk.bf16.vlgmr.msra.gmra.mrb[0].mxu1 %vm146_vm2, %v1607_v9 }
 0x194   :  { %1231 = vmatprep.mubr.msk.bf16.mxu1 %vm1495_vm0, %v1494_v0 }
 0x197   :  { %1226 = vmatmul.mubr.msk.bf16.vlgmr.msra.gmra.mrb[4].mxu0 %vm146_vm2, %v1610_v12 }
 0x198   :  { %1237 = vmatprep.mubr.msk.bf16.mxu0 %vm1495_vm0, %v1494_v0 }
 0x266   :  { %v187_v17 = vpop.f32.mrb[0].mxu1 }
 0x267   :  { %v1221_v18 = vpop.f32.mrb[1].mxu1  ;;  %v241_v19 = vsel %vm146_vm2, %v187_v17, -inf }
 0x268   :  { %242 = vmax.xlane.f32.xlu1 %v241_v19  ;;  %v190_v20 = vpop.f32.mrb[2].mxu1 }
 0x269   :  { %v1222_v21 = vpop.f32.mrb[3].mxu1 }
 0x26a   :  { %v235_v22 = vpop.f32.mrb[4].mxu0 }
 0x26b   :  { %v1227_v23 = vpop.f32.mrb[5].mxu0  ;;  %v244_v24 = vsel %vm146_vm2, %v235_v22, -inf }
 0x26c   :  { %245 = vmax.xlane.f32.xlu1 %v244_v24  ;;  %v238_v25 = vpop.f32.mrb[6].mxu0 }
 0x26d   :  { %v1228_v26 = vpop.f32.mrb[7].mxu0 }
 0x27d   :  { %265 = vrot.lane.b32.xlu1 %v1607_v9, %s1491_s30 }
 0x281   :  { %314 = vrot.lane.b32.xlu1 %v1610_v12, %s1491_s30  ;;  %s1498_s30 = smov 120  }
 0x285   :  { %364 = vrot.lane.b32.xlu1 %v1607_v9, %s1497_s2 }
 0x2f5   :  { %v243_v27 = vpop.xlane.xlu1 %242 }
 0x2f6   :  { %v247_v28 = vsub.f32 %v187_v17, %v243_v27 }
 0x2f8   :  { %v249_v29 = vmul.f32 1.442695, %v247_v28 }
 0x2f9   :  { %v246_v30 = vpop.xlane.xlu1 %245 }
 0x2fa   :  { %1363 = vpow2.f32 %v249_v29  ;;  %v248_v31 = vsub.f32 %v235_v22, %v246_v30 }
 0x2fc   :  { %v251_v32 = vmul.f32 1.442695, %v248_v31 }
 0x2fd   :  { %v266_v33 = vpop.permute.xlu1 %265 }
 0x2fe   :  { %1365 = vpow2.f32 %v251_v32  ;;  %v272_v34 = vsel %vm270_vm3, %v266_v33, 0 }
 0x2ff   :  { %1230 = vmatpush3.bf16.msra.mxu1 %v272_v34 }
 0x300   :  { %1241 = vmatprep.subr.bf16.mxu1 %v1494_v0 }
 0x301   :  { %v315_v35 = vpop.permute.xlu1 %314 }
 0x302   :  { %v320_v36 = vsel %vm270_vm3, %v315_v35, 0 }
 0x303   :  { %1236 = vmatpush3.bf16.msra.mxu0 %v320_v36 }
 0x304   :  { %v1364_v37 = vpop.eup %1363  ;;  %1247 = vmatprep.subr.bf16.mxu0 %v1494_v0 }
 0x305   :  { %v253_v38 = vsel %vm146_vm2, %v1364_v37, 0.0  ;;  %v365_v41 = vpop.permute.xlu1 %364 }
 0x306   :  { %254 = vadd.xlane.f32.xlu0 %v253_v38  ;;  %v370_v48 = vsel %vm146_vm2, %v365_v41, 0 }
 0x308   :  { %v1366_v39 = vpop.eup %1365 }
 0x309   :  { %v256_v40 = vsel %vm146_vm2, %v1366_v39, 0.0 }
 0x30a   :  { %257 = vadd.xlane.f32.xlu1 %v256_v40 }
 0x31b   :  { %414 = vrot.lane.b32.xlu1 %v1610_v12, %s1497_s2 }
 0x31c   :  { %362 = vrot.lane.b32.xlu0 %v1607_v9, %s1498_s30 }
 0x31f   :  { %412 = vrot.lane.b32.xlu1 %v1610_v12, %s1498_s30 }
 0x393   :  { %v255_v42 = vpop.xlane.xlu0 %254 }
 0x394   :  { %1367 = vrcp.f32 %v255_v42 }
 0x397   :  { %v258_v43 = vpop.xlane.xlu1 %257  ;;  %v363_v53 = vpop.permute.xlu0 %362 }
 0x398   :  { %1369 = vrcp.f32 %v258_v43 }
 0x39b   :  { %v415_v50 = vpop.permute.xlu1 %414 }
 0x39c   :  { %v420_v52 = vsel %vm146_vm2, %v415_v50, 0 }
 0x39e   :  { %v1368_v44 = vpop.eup %1367 }
 0x39f   :  { %v261_v45 = vmul.f32 %v1368_v44, %v1364_v37  ;;  %v413_v54 = vpop.permute.xlu1 %412 }
 0x3a1   :  { %v263_v46 = vpack.c.bf16 %v261_v45, %v261_v45 }
 0x3a2   :  { %v1370_v47 = vpop.eup %1369 }
 0x3a3   :  { %v262_v49 = vmul.f32 %v1370_v47, %v1366_v39  ;;  %1232 = vmatmul.mubr.msk.bf16.vlgmr.msra.gmra.mrb[4].mxu1 %vm146_vm2, %v263_v46 }
 0x3a4   :  { %1242 = vmatpush3.bf16.xpose.msra.mxu1 %v370_v48  ;;  %1243 = vmatprep.mubr.msk.bf16.mxu1 %vm1495_vm0, %v1494_v0 }
 0x3a5   :  { %v264_v51 = vpack.c.bf16 %v262_v49, %v262_v49  ;;  %1253 = vmatprep.subr.bf16.mxu1 %v1494_v0 }
 0x3a7   :  { %1238 = vmatmul.mubr.msk.bf16.vlgmr.msra.gmra.mrb[8].mxu0 %vm146_vm2, %v264_v51 }
 0x3a8   :  { %1248 = vmatpush3.bf16.xpose.msra.mxu0 %v420_v52  ;;  %1249 = vmatprep.mubr.msk.bf16.mxu0 %vm1495_vm0, %v1494_v0 }
 0x3a9   :  { %1259 = vmatprep.subr.bf16.mxu0 %v1494_v0 }
 0x3ab   :  { %1244 = vmatmul.mubr.msk.bf16.vlgmr.msra.gmra.mrb[8].mxu1 %vm146_vm2, %v363_v53 }
 0x3ac   :  { %1255 = vmatprep.mubr.msk.bf16.mxu1 %vm1495_vm0, %v1494_v0 }
 0x3af   :  { %1250 = vmatmul.mubr.msk.bf16.vlgmr.msra.gmra.mrb[12].mxu0 %vm146_vm2, %v413_v54 }
 0x3b0   :  { %1261 = vmatprep.mubr.msk.bf16.mxu0 %vm1495_vm0, %v1494_v0 }
 0x476   :  { %v1657_v55 = vpop.f32.mrb[4].mxu1 }
 0x477   :  { %v1233_v56 = vpop.f32.mrb[5].mxu1 }
 0x478   :  { %v311_v57 = vpop.f32.mrb[6].mxu1 }
 0x479   :  { %v1234_v58 = vpop.f32.mrb[7].mxu1 }
 0x47a   :  { %v1659_v59 = vpop.f32.mrb[8].mxu0 }
 0x47b   :  { %v1239_v60 = vpop.f32.mrb[9].mxu0 }
 0x47c   :  { %v359_v61 = vpop.f32.mrb[10].mxu0 }
 0x47d   :  { %v1240_v62 = vpop.f32.mrb[11].mxu0 }
 0x47e   :  { %v406_v63 = vpop.f32.mrb[8].mxu1 }
 0x47f   :  { %v1245_v1 = vpop.f32.mrb[9].mxu1  ;;  %v462_v2 = vsel %vm146_vm2, %v406_v63, -inf }
 0x480   :  { %463 = vmax.xlane.f32.xlu1 %v462_v2  ;;  %v409_v3 = vpop.f32.mrb[10].mxu1 }
 0x481   :  { %v1246_v4 = vpop.f32.mrb[11].mxu1 }
 0x482   :  { %v456_v5 = vpop.f32.mrb[12].mxu0 }
 0x483   :  { %v1251_v6 = vpop.f32.mrb[13].mxu0  ;;  %v465_v7 = vsel %vm146_vm2, %v456_v5, -inf }
 0x484   :  { %466 = vmax.xlane.f32.xlu0 %v465_v7  ;;  %v459_v8 = vpop.f32.mrb[14].mxu0 }
 0x485   :  { %v1252_v10 = vpop.f32.mrb[15].mxu0 }
 0x491   :  { %486 = vrot.lane.b32.xlu1 %v1607_v9, %s1499_s7 }
 0x495   :  { %584 = vrot.lane.b32.xlu1 %v1607_v9, %s1500_s8 }
 0x49a   :  { %534 = vrot.lane.b32.xlu0 %v1610_v12, %s1499_s7 }
 0x49e   :  { %582 = vrot.lane.b32.xlu0 %v1607_v9, %s1501_s9 }
 0x50d   :  { %v464_v11 = vpop.xlane.xlu1 %463 }
 0x50e   :  { %v468_v13 = vsub.f32 %v406_v63, %v464_v11 }
 0x510   :  { %v470_v14 = vmul.f32 1.442695, %v468_v13 }
 0x511   :  { %v487_v15 = vpop.permute.xlu1 %486  ;;  %v467_v16 = vpop.xlane.xlu0 %466 }
 0x512   :  { %1371 = vpow2.f32 %v470_v14  ;;  %v492_v17 = vsel %vm270_vm3, %v487_v15, 0  ;;  %v469_v18 = vsub.f32 %v456_v5, %v467_v16 }
 0x513   :  { %1254 = vmatpush3.bf16.msra.mxu1 %v492_v17 }
 0x514   :  { %v472_v19 = vmul.f32 1.442695, %v469_v18  ;;  %1265 = vmatprep.subr.bf16.mxu1 %v1494_v0 }
 0x515   :  { %v535_v20 = vpop.permute.xlu0 %534  ;;  %v585_v26 = vpop.permute.xlu1 %584 }
 0x516   :  { %1373 = vpow2.f32 %v472_v19  ;;  %v540_v21 = vsel %vm270_vm3, %v535_v20, 0  ;;  %v590_v33 = vsel %vm146_vm2, %v585_v26, 0 }
 0x517   :  { %1260 = vmatpush3.bf16.msra.mxu0 %v540_v21 }
 0x518   :  { %1271 = vmatprep.subr.bf16.mxu0 %v1494_v0 }
 0x519   :  { %v583_v38 = vpop.permute.xlu0 %582 }
 0x51c   :  { %v1372_v22 = vpop.eup %1371 }
 0x51d   :  { %v474_v23 = vsel %vm146_vm2, %v1372_v22, 0.0 }
 0x51e   :  { %475 = vadd.xlane.f32.xlu1 %v474_v23 }
 0x520   :  { %v1374_v24 = vpop.eup %1373 }
 0x521   :  { %v477_v25 = vsel %vm146_vm2, %v1374_v24, 0.0 }
 0x522   :  { %478 = vadd.xlane.f32.xlu1 %v477_v25 }
 0x533   :  { %634 = vrot.lane.b32.xlu1 %v1610_v12, %s1500_s8 }
 0x537   :  { %632 = vrot.lane.b32.xlu1 %v1610_v12, %s1501_s9 }
 0x5ab   :  { %v476_v27 = vpop.xlane.xlu1 %475 }
 0x5ac   :  { %1375 = vrcp.f32 %v476_v27 }
 0x5af   :  { %v479_v28 = vpop.xlane.xlu1 %478 }
 0x5b0   :  { %1377 = vrcp.f32 %v479_v28 }
 0x5b3   :  { %v635_v35 = vpop.permute.xlu1 %634 }
 0x5b4   :  { %v640_v37 = vsel %vm146_vm2, %v635_v35, 0 }
 0x5b6   :  { %v1376_v29 = vpop.eup %1375 }
 0x5b7   :  { %v482_v30 = vmul.f32 %v1376_v29, %v1372_v22  ;;  %v633_v39 = vpop.permute.xlu1 %632 }
 0x5b9   :  { %v484_v31 = vpack.c.bf16 %v482_v30, %v482_v30 }
 0x5ba   :  { %v1378_v32 = vpop.eup %1377 }
 0x5bb   :  { %v483_v34 = vmul.f32 %v1378_v32, %v1374_v24  ;;  %1256 = vmatmul.mubr.msk.bf16.vlgmr.msra.gmra.mrb[12].mxu1 %vm146_vm2, %v484_v31 }
 0x5bc   :  { %1266 = vmatpush3.bf16.xpose.msra.mxu1 %v590_v33  ;;  %1267 = vmatprep.mubr.msk.bf16.mxu1 %vm1495_vm0, %v1494_v0 }
 0x5bd   :  { %v485_v36 = vpack.c.bf16 %v483_v34, %v483_v34  ;;  %1277 = vmatprep.subr.bf16.mxu1 %v1494_v0 }
 0x5bf   :  { %1262 = vmatmul.mubr.msk.bf16.vlgmr.msra.gmra.mrb[16].mxu0 %vm146_vm2, %v485_v36 }
 0x5c0   :  { %1272 = vmatpush3.bf16.xpose.msra.mxu0 %v640_v37  ;;  %1273 = vmatprep.mubr.msk.bf16.mxu0 %vm1495_vm0, %v1494_v0 }
 0x5c1   :  { %1283 = vmatprep.subr.bf16.mxu0 %v1494_v0 }
 0x5c3   :  { %1268 = vmatmul.mubr.msk.bf16.vlgmr.msra.gmra.mrb[16].mxu1 %vm146_vm2, %v583_v38 }
 0x5c4   :  { %1279 = vmatprep.mubr.msk.bf16.mxu1 %vm1495_vm0, %v1494_v0 }
 0x5c7   :  { %1274 = vmatmul.mubr.msk.bf16.vlgmr.msra.gmra.mrb[20].mxu0 %vm146_vm2, %v633_v39 }
 0x5c8   :  { %1285 = vmatprep.mubr.msk.bf16.mxu0 %vm1495_vm0, %v1494_v0 }
 0x68e   :  { %v1691_v40 = vpop.f32.mrb[12].mxu1 }
 0x68f   :  { %v1257_v41 = vpop.f32.mrb[13].mxu1 }
 0x690   :  { %v531_v42 = vpop.f32.mrb[14].mxu1 }
 0x691   :  { %v1258_v43 = vpop.f32.mrb[15].mxu1 }
 0x692   :  { %v1693_v44 = vpop.f32.mrb[16].mxu0 }
 0x693   :  { %v1343_v45 = vpack.i.bf16 %v1693_v44, %v1691_v40  ;;  %v1263_v46 = vpop.f32.mrb[17].mxu0 }
 0x694   :  { %v579_v47 = vpop.f32.mrb[18].mxu0 }
 0x695   :  { %v1264_v48 = vpop.f32.mrb[19].mxu0 }
 0x696   :  { %v626_v49 = vpop.f32.mrb[16].mxu1 }
 0x697   :  { %v1269_v50 = vpop.f32.mrb[17].mxu1  ;;  %v682_v51 = vsel %vm146_vm2, %v626_v49, -inf }
 0x698   :  { %683 = vmax.xlane.f32.xlu0 %v682_v51  ;;  %v629_v52 = vpop.f32.mrb[18].mxu1 }
 0x699   :  { %v1270_v53 = vpop.f32.mrb[19].mxu1 }
 0x69a   :  { %v676_v54 = vpop.f32.mrb[20].mxu0 }
 0x69b   :  { %v1275_v56 = vpop.f32.mrb[21].mxu0  ;;  %v685_v57 = vsel %vm146_vm2, %v676_v54, -inf }
 0x69c   :  { %686 = vmax.xlane.f32.xlu1 %v685_v57  ;;  %v679_v58 = vpop.f32.mrb[22].mxu0 }
 0x69d   :  { %v1276_v60 = vpop.f32.mrb[23].mxu0 }
 0x6ad   :  { %706 = vrot.lane.b32.xlu1 %v1607_v9, %s1502_s10 }
 0x6b1   :  { %804 = vrot.lane.b32.xlu1 %v1607_v9, %s1503_s11 }
 0x6b5   :  { %854 = vrot.lane.b32.xlu1 %v1610_v12, %s1503_s11 }
 0x6b9   :  { %852 = vrot.lane.b32.xlu1 %v1610_v12, %s1504_s12 }
 0x725   :  { %v684_v61 = vpop.xlane.xlu0 %683 }
 0x726   :  { %v688_v62 = vsub.f32 %v626_v49, %v684_v61 }
 0x728   :  { %v690_v63 = vmul.f32 1.442695, %v688_v62 }
 0x729   :  { %v687_v1 = vpop.xlane.xlu1 %686 }
 0x72a   :  { %1379 = vpow2.f32 %v690_v63  ;;  %v689_v2 = vsub.f32 %v676_v54, %v687_v1 }
 0x72c   :  { %v692_v3 = vmul.f32 1.442695, %v689_v2 }
 0x72d   :  { %v707_v4 = vpop.permute.xlu1 %706 }
 0x72e   :  { %1381 = vpow2.f32 %v692_v3  ;;  %v712_v5 = vsel %vm270_vm3, %v707_v4, 0 }
 0x72f   :  { %1278 = vmatpush3.bf16.msra.mxu1 %v712_v5 }
 0x730   :  { %1289 = vmatprep.subr.bf16.mxu1 %v1494_v0 }
 0x731   :  { %v805_v17 = vpop.permute.xlu1 %804 }
 0x732   :  { %v810_v21 = vsel %vm146_vm2, %v805_v17, 0 }
 0x734   :  { %v1380_v6 = vpop.eup %1379 }
 0x735   :  { %v694_v7 = vsel %vm146_vm2, %v1380_v6, 0.0  ;;  %v855_v23 = vpop.permute.xlu1 %854 }
 0x736   :  { %695 = vadd.xlane.f32.xlu0 %v694_v7  ;;  %v860_v25 = vsel %vm146_vm2, %v855_v23, 0  ;;  %v1362_v7 = vld [vmem:[#allocation7 + $0x8] sm:$0xff]  }
 0x738   :  { %v1382_v8 = vpop.eup %1381 }
 0x739   :  { %v697_v10 = vsel %vm146_vm2, %v1382_v8, 0.0  ;;  %v853_v27 = vpop.permute.xlu1 %852 }
 0x73a   :  { %698 = vadd.xlane.f32.xlu0 %v697_v10 }
 0x750   :  { %754 = vrot.lane.b32.xlu0 %v1610_v12, %s1502_s10 }
 0x754   :  { %802 = vrot.lane.b32.xlu0 %v1607_v9, %s1504_s12 }
 0x7c3   :  { %v696_v11 = vpop.xlane.xlu0 %695 }
 0x7c4   :  { %1383 = vrcp.f32 %v696_v11 }
 0x7c7   :  { %v699_v13 = vpop.xlane.xlu0 %698 }
 0x7c8   :  { %1385 = vrcp.f32 %v699_v13 }
 0x7cb   :  { %v755_v14 = vpop.permute.xlu0 %754 }
 0x7cc   :  { %v760_v15 = vsel %vm270_vm3, %v755_v14, 0 }
 0x7cd   :  { %1284 = vmatpush3.bf16.msra.mxu0 %v760_v15 }
 0x7ce   :  { %v1384_v16 = vpop.eup %1383  ;;  %1295 = vmatprep.subr.bf16.mxu0 %v1494_v0 }
 0x7cf   :  { %v702_v18 = vmul.f32 %v1384_v16, %v1380_v6  ;;  %v803_v26 = vpop.permute.xlu0 %802 }
 0x7d1   :  { %v704_v19 = vpack.c.bf16 %v702_v18, %v702_v18 }
 0x7d2   :  { %v1386_v20 = vpop.eup %1385 }
 0x7d3   :  { %v703_v22 = vmul.f32 %v1386_v20, %v1382_v8  ;;  %1280 = vmatmul.mubr.msk.bf16.vlgmr.msra.gmra.mrb[20].mxu1 %vm146_vm2, %v704_v19 }
 0x7d4   :  { %1290 = vmatpush3.bf16.xpose.msra.mxu1 %v810_v21  ;;  %1291 = vmatprep.mubr.msk.bf16.mxu1 %vm1495_vm0, %v1494_v0 }
 0x7d5   :  { %v705_v24 = vpack.c.bf16 %v703_v22, %v703_v22  ;;  %1301 = vmatprep.subr.bf16.mxu1 %v1494_v0 }
 0x7d7   :  { %1286 = vmatmul.mubr.msk.bf16.vlgmr.msra.gmra.mrb[24].mxu0 %vm146_vm2, %v705_v24 }
 0x7d8   :  { %1296 = vmatpush3.bf16.xpose.msra.mxu0 %v860_v25  ;;  %1297 = vmatprep.mubr.msk.bf16.mxu0 %vm1495_vm0, %v1494_v0 }
 0x7d9   :  { %1307 = vmatprep.subr.bf16.mxu0 %v1494_v0 }
 0x7db   :  { %1292 = vmatmul.mubr.msk.bf16.vlgmr.msra.gmra.mrb[24].mxu1 %vm146_vm2, %v803_v26 }
 0x7dc   :  { %1303 = vmatprep.mubr.msk.bf16.mxu1 %vm1495_vm0, %v1494_v0 }
 0x7df   :  { %1298 = vmatmul.mubr.msk.bf16.vlgmr.msra.gmra.mrb[28].mxu0 %vm146_vm2, %v853_v27 }
 0x7e0   :  { %1309 = vmatprep.mubr.msk.bf16.mxu0 %vm1495_vm0, %v1494_v0 }
 0x8a6   :  { %v748_v28 = vpop.f32.mrb[20].mxu1 }
 0x8a7   :  { %v1281_v29 = vpop.f32.mrb[21].mxu1 }
 0x8a8   :  { %v751_v30 = vpop.f32.mrb[22].mxu1 }
 0x8a9   :  { %v1282_v31 = vpop.f32.mrb[23].mxu1 }
 0x8aa   :  { %v796_v32 = vpop.f32.mrb[24].mxu0 }
 0x8ab   :  { %v1348_v33 = vpack.i.bf16 %v796_v32, %v748_v28  ;;  %v1287_v34 = vpop.f32.mrb[25].mxu0 }
 0x8ac   :  { %v799_v35 = vpop.f32.mrb[26].mxu0  ;;  %v1165_v34 = vld [vmem:[%s1772_s4] ss:$0 sm:$0xff] }
 0x8ad   :  { %v1288_v36 = vpop.f32.mrb[27].mxu0 }
 0x8ae   :  { %v846_v37 = vpop.f32.mrb[24].mxu1 }
 0x8af   :  { %v1293_v38 = vpop.f32.mrb[25].mxu1  ;;  %v902_v39 = vsel %vm146_vm2, %v846_v37, -inf }
 0x8b0   :  { %903 = vmax.xlane.f32.xlu0 %v902_v39  ;;  %v849_v41 = vpop.f32.mrb[26].mxu1 }
 0x8b1   :  { %v1294_v42 = vpop.f32.mrb[27].mxu1 }
 0x8b2   :  { %v896_v43 = vpop.f32.mrb[28].mxu0 }
 0x8b3   :  { %v1299_v46 = vpop.f32.mrb[29].mxu0  ;;  %v905_v47 = vsel %vm146_vm2, %v896_v43, -inf }
 0x8b4   :  { %906 = vmax.xlane.f32.xlu1 %v905_v47  ;;  %v899_v48 = vpop.f32.mrb[30].mxu0 }
 0x8b5   :  { %v1300_v49 = vpop.f32.mrb[31].mxu0 }
 0x8c5   :  { %926 = vrot.lane.b32.xlu1 %v1607_v9, %s1505_s13 }
 0x8c9   :  { %1344 = vrot.lane.b32.xlu1 %v1343_v45, %s1506_s14 }
 0x8cd   :  { %1349 = vrot.lane.b32.xlu1 %v1348_v33, %s1507_s15 }
 0x93d   :  { %v904_v50 = vpop.xlane.xlu0 %903 }
 0x93e   :  { %v908_v51 = vsub.f32 %v846_v37, %v904_v50 }
 0x940   :  { %v910_v52 = vmul.f32 1.442695, %v908_v51 }
 0x941   :  { %v907_v53 = vpop.xlane.xlu1 %906 }
 0x942   :  { %1387 = vpow2.f32 %v910_v52  ;;  %v909_v54 = vsub.f32 %v896_v43, %v907_v53 }
 0x944   :  { %v912_v56 = vmul.f32 1.442695, %v909_v54 }
 0x945   :  { %v927_v57 = vpop.permute.xlu1 %926 }
 0x946   :  { %1389 = vpow2.f32 %v912_v56  ;;  %v932_v58 = vsel %vm270_vm3, %v927_v57, 0 }
 0x947   :  { %1302 = vmatpush3.bf16.msra.mxu1 %v932_v58 }
 0x948   :  { %1313 = vmatprep.subr.bf16.mxu1 %v1494_v0 }
 0x949   :  { %v1345_v19 = vpop.permute.xlu1 %1344 }
 0x94a   :  { %v1347_v21 = vunpack.i.h.bf16 %v1345_v19  ;;  %v1346_v22 = vunpack.i.l.bf16 %v1345_v19 }
 0x94c   :  { %v1388_v9 = vpop.eup %1387  ;;  %v1047_v25 = vsel %vm146_vm2, %v1659_v59, %v1347_v21  ;;  %v1046_v26 = vsel %vm146_vm2, %v1657_v55, %v1346_v22 }
 0x94d   :  { %v914_v40 = vsel %vm146_vm2, %v1388_v9, 0.0  ;;  %v1350_v20 = vpop.permute.xlu1 %1349 }
 0x94e   :  { %915 = vadd.xlane.f32.xlu0 %v914_v40  ;;  %v1352_v23 = vunpack.i.h.bf16 %v1350_v20  ;;  %v1351_v24 = vunpack.i.l.bf16 %v1350_v20 }
 0x950   :  { %v1390_v44 = vpop.eup %1389  ;;  %v1049_v29 = vsel %vm1048_vm4, %v1046_v26, %v1351_v24  ;;  %v1050_v30 = vsel %vm1048_vm4, %v1047_v25, %v1352_v23 }
 0x951   :  { %v917_v45 = vsel %vm146_vm2, %v1390_v44, 0.0 }
 0x952   :  { %918 = vadd.xlane.f32.xlu0 %v917_v45 }
 0x968   :  { %974 = vrot.lane.b32.xlu0 %v1610_v12, %s1505_s13  ;;  %v1361_v12 = vld [vmem:[#allocation7] sm:$0xff]  }
 0x9db   :  { %v916_v60 = vpop.xlane.xlu0 %915 }
 0x9dc   :  { %1391 = vrcp.f32 %v916_v60 }
 0x9df   :  { %v919_v61 = vpop.xlane.xlu0 %918 }
 0x9e0   :  { %1393 = vrcp.f32 %v919_v61 }
 0x9e3   :  { %v975_v62 = vpop.permute.xlu0 %974 }
 0x9e4   :  { %v980_v63 = vsel %vm270_vm3, %v975_v62, 0 }
 0x9e5   :  { %1308 = vmatpush3.bf16.msra.mxu0 %v980_v63 }
 0x9e6   :  { %v1392_v1 = vpop.eup %1391 }
 0x9e7   :  { %v922_v2 = vmul.f32 %v1392_v1, %v1388_v9 }
 0x9e9   :  { %v924_v3 = vpack.c.bf16 %v922_v2, %v922_v2 }
 0x9ea   :  { %v1394_v4 = vpop.eup %1393 }
 0x9eb   :  { %v923_v5 = vmul.f32 %v1394_v4, %v1390_v44  ;;  %1304 = vmatmul.mubr.msk.bf16.vlgmr.msra.gmra.mrb[28].mxu1 %vm146_vm2, %v924_v3 }
 0x9ec   :  { %1317 = vmatprep.mubr.msk.bf16.mxu1 %vm1495_vm0, %v1494_v0  ;;  %1314 = vmatpush3.bf16.msra.mxu1 %v1361_v12 }
 0x9ed   :  { %v925_v6 = vpack.c.bf16 %v923_v5, %v923_v5  ;;  %1315 = vmatprep.subr.bf16.mxu1 %v1494_v0 }
 0x9ef   :  { %1310 = vmatmul.mubr.msk.bf16.vlgmr.msra.gmra.mrb[32].mxu0 %vm146_vm2, %v925_v6 }
 0x9f0   :  { %1316 = vmatpush3.bf16.msra.mxu1 %v1362_v7 }
 0xabe   :  { %v968_v8 = vpop.f32.mrb[28].mxu1 }
 0xabf   :  { %v1305_v10 = vpop.f32.mrb[29].mxu1 }
 0xac0   :  { %v971_v11 = vpop.f32.mrb[30].mxu1 }
 0xac1   :  { %v1306_v13 = vpop.f32.mrb[31].mxu1 }
 0xac2   :  { %v1016_v14 = vpop.f32.mrb[32].mxu0 }
 0xac3   :  { %v1353_v15 = vpack.i.bf16 %v1016_v14, %v968_v8  ;;  %v1311_v16 = vpop.f32.mrb[33].mxu0 }
 0xac4   :  { %v1019_v17 = vpop.f32.mrb[34].mxu0 }
 0xac5   :  { %1354 = vrot.lane.b32.xlu0 %v1353_v15, %s1508_s16  ;;  %v1312_v18 = vpop.f32.mrb[35].mxu0 }
 0xb37   :  { %v1355_v0 = vpop.permute.xlu0 %1354 }
 0xb38   :  { %v1357_v27 = vunpack.i.h.bf16 %v1355_v0  ;;  %v1356_v28 = vunpack.i.l.bf16 %v1355_v0 }
 0xb3a   :  { %v1053_v31 = vsel %vm1051_vm5, %v1050_v30, %v1357_v27  ;;  %v1052_v32 = vsel %vm1051_vm5, %v1049_v29, %v1356_v28 }
 0xb3b   :  { %v1054_v33 = vpack.c.bf16 %v1053_v31, %v1052_v32 }
 0xb3d   :  { %1318 = vmatmul.mubr.msk.bf16.vlgmr.msra.gmra.mrb[32].mxu1 %vm93_vm1, %v1054_v33 }
 0xc10   :  { %v1115_v35 = vpop.f32.mrb[32].mxu1 }
 0xc11   :  { %v1116_v59 = vadd.f32 %v1165_v34, %v1115_v35  ;;  %v1319_v36 = vpop.f32.mrb[33].mxu1 }
 0xc12   :  { %v1118_v37 = vpop.f32.mrb[34].mxu1 }
 0xc13   :  { %1122 = vst.msk [vmem:[#allocation8] sm:$0xff] %vm93_vm1, %v1116_v59  ;;  %v1119_v55 = vadd.f32 %v1165_v34, %v1118_v37  ;;  %v1320_v38 = vpop.f32.mrb[35].mxu1 }
 0xc15   :  { %1123 = vst.msk [vmem:[#allocation8 + $0x8] sm:$0xff] %vm93_vm1, %v1119_v55 }
 0xc16   :  { %1472 = shalt.err (!%p1469_p0)
}
 0xc17   :  { %s1473_s23 = scalar_lea.hbm %s1773_s5, 256 }
 0xc18   :  { %p1474_p1 = scmp.ne.s32.totalorder %s1773_s5, %s1473_s23  ;;  %p1477_p2 = scmp.lt.u32.totalorder %s1473_s23, %s1773_s5 }
 0xc1a   :  { %p1479_p3 = pnand %p1477_p2, %p1474_p1 }
 0xc1c   :  { %1482 = shalt.err (!%p1479_p3)
}
 0xc1d   :  { %s1510_s28 = smov 128  }
 0xc1e   :  { %1135 = dma.vmem_to_hbm [thread:$0]  %s1130_s19, 256, %s1773_s5, [#allocation4], %s1510_s28, %s1510_s28, %s1506_s14  }
 0xc1f   :  { %1487 = dma.done.wait [#allocation4], 256  }
 0xc20   :  { %1488 = vsyncadd [#allocation4], 4294967040 }
 0xc21   :  { %1139 = vsyncpa [#allocation3], 1 }
 0xc22   :  { %1140 = vsyncpa [#allocation6], 1 }
 0xc23   :  { %1141 = vsyncpa [#allocation4], 1 }

// kernel: tpu_custom_call.1
= control target key start
LH: loop header
LB: loop body
LE: loop exit
PB: predicated region body
PF: predicated region fallthrough
CT: control target
= control target key end

     0   :  { %10 = vsyncpa [#allocation3], 0  ;;  %s1768_s0 = inlined_call_operand.hbm [shape: bf16[2,8,32], index: 0, kind: input, shape index: {}]   ;;  %s1769_s1 = inlined_call_operand.hbm [shape: bf16[32,96], index: 1, kind: input, shape index: {}]   ;;  %s1770_s2 = inlined_call_operand.vmem [shape: f32[1,96], index: 2, kind: input, shape index: {}]   ;;  %s1771_s3 = inlined_call_operand.hbm [shape: bf16[32,32], index: 3, kind: input, shape index: {}]   ;;  %s1772_s4 = inlined_call_operand.vmem [shape: f32[1,32], index: 4, kind: input, shape index: {}]   ;;  %s1773_s5 = inlined_call_operand.hbm [shape: f32[2,8,32], index: 5, kind: output, shape index: {}]  }
   0x1   :  { %11 = vsyncpa [#allocation6], 0 }
   0x2   :  { %12 = vsyncpa [#allocation4], 0  ;;  %s1489_s18 = smov [#allocation5]   ;;  %s1490_s20 = smov [#allocation2]  }
   0x3   :  { %s30_s19 = sshll.u32 %s1489_s18, 4  ;;  %s18_s21 = sshll.u32 %s1490_s20, 4  ;;  %s31_s19 = int_to_ptr.vmem [resolvable:$true] %s30_s19  ;;  %s1541_s21 = int_to_ptr.vmem [resolvable:$true] %s18_s21 }
   0x4   :  { %s1395_s24 = scalar_lea.hbm %s1769_s1, 256 }
   0x5   :  { %p1396_p0 = scmp.ne.s32.totalorder %s1769_s1, %s1395_s24  ;;  %p1399_p1 = scmp.lt.u32.totalorder %s1395_s24, %s1769_s1 }
   0x7   :  { %p1401_p2 = pnand %p1399_p1, %p1396_p0 }
   0x9   :  { %1404 = shalt.err (!%p1401_p2)
}
   0xa   :  { %s1405_s29 = scalar_lea.vmem %s31_s19, 256  ;;  %p1410_p4 = scmp.lt.s32.totalorder %s31_s19, %s31_s19 }
   0xb   :  { %p1406_p3 = scmp.ne.s32.totalorder %s31_s19, %s1405_s29  ;;  %p1411_p5 = scmp.lt.s32.totalorder %s1405_s29, %s1405_s29 }
   0xd   :  { %p1412_p6 = por %p1411_p5, %p1410_p4 }
   0xf   :  { %p1413_p7 = pnand %p1412_p6, %p1406_p3 }
  0x11   :  { %1416 = shalt.err (!%p1413_p7)
}
  0x12   :  { %s1491_s30 = smov 64   ;;  %s1492_s6 = smov 4  }
  0x13   :  { %36 = dma.hbm_to_vmem [thread:$0]  %s1769_s1, 256, %s31_s19, [#allocation6], %s1491_s30, %s1491_s30, %s1492_s6  }
  0x14   :  { %s1417_s11 = scalar_lea.hbm %s1768_s0, 128 }
  0x15   :  { %p1418_p8 = scmp.ne.s32.totalorder %s1768_s0, %s1417_s11  ;;  %p1421_p9 = scmp.lt.u32.totalorder %s1417_s11, %s1768_s0 }
  0x17   :  { %p1423_p10 = pnand %p1421_p9, %p1418_p8 }
  0x19   :  { %1426 = shalt.err (!%p1423_p10)
}
  0x1a   :  { %s1427_s16 = scalar_lea.vmem %s1541_s21, 128  ;;  %p1432_p12 = scmp.lt.s32.totalorder %s1541_s21, %s1541_s21 }
  0x1b   :  { %p1428_p11 = scmp.ne.s32.totalorder %s1541_s21, %s1427_s16  ;;  %p1433_p13 = scmp.lt.s32.totalorder %s1427_s16, %s1427_s16 }
  0x1d   :  { %p1434_p0 = por %p1433_p13, %p1432_p12 }
  0x1f   :  { %p1435_p1 = pnand %p1434_p0, %p1428_p11 }
  0x21   :  { %1438 = shalt.err (!%p1435_p1)
}
  0x22   :  { %24 = dma.hbm_to_vmem [thread:$0]  %s1768_s0, 128, %s1541_s21, [#allocation3], %s1491_s30, %s1491_s30, %s1492_s6  }
  0x23   :  { %s1493_s18 = smov [#allocation7]   ;;  %s1439_s23 = scalar_lea.hbm %s1771_s3, 256 }
  0x24   :  { %s44_s19 = sshll.u32 %s1493_s18, 4  ;;  %p1440_p2 = scmp.ne.s32.totalorder %s1771_s3, %s1439_s23  ;;  %s45_s19 = int_to_ptr.vmem [resolvable:$true] %s44_s19 }
  0x25   :  { %p1443_p3 = scmp.lt.u32.totalorder %s1439_s23, %s1771_s3 }
  0x27   :  { %p1445_p4 = pnand %p1443_p3, %p1440_p2 }
  0x29   :  { %1448 = shalt.err (!%p1445_p4)
}
  0x2a   :  { %s1449_s28 = scalar_lea.vmem %s45_s19, 256  ;;  %p1454_p6 = scmp.lt.s32.totalorder %s45_s19, %s45_s19 }
  0x2b   :  { %p1450_p5 = scmp.ne.s32.totalorder %s45_s19, %s1449_s28  ;;  %p1455_p7 = scmp.lt.s32.totalorder %s1449_s28, %s1449_s28 }
  0x2d   :  { %p1456_p8 = por %p1455_p7, %p1454_p6 }
  0x2f   :  { %p1457_p9 = pnand %p1456_p8, %p1450_p5 }
  0x31   :  { %1460 = shalt.err (!%p1457_p9)
}
  0x32   :  { %50 = dma.hbm_to_vmem [thread:$0]  %s1771_s3, 256, %s45_s19, [#allocation6], %s1491_s30, %s1491_s30, %s1492_s6  }
  0x33   :  { %1483 = dma.done.wait [#allocation3], 128  }
  0x34   :  { %1484 = vsyncadd [#allocation3], 4294967168 }
  0x35   :  { %1485 = dma.done.wait [#allocation6], 512  }
  0x36   :  { %1486 = vsyncadd [#allocation6], 4294966784  ;;  %v1494_v0 = vmov 0.0   ;;  %vm1495_vm0 = vmmov 0   ;;  %v1358_v1 = vld [vmem:[#allocation5] sm:$0xff]   ;;  %v1359_v2 = vld [vmem:[#allocation5 + $0x8] sm:$0xff]  }
  0x37   :  { %1209 = vmatprep.subr.bf16.mxu0 %v1494_v0  ;;  %1213 = vmatprep.mubr.msk.bf16.mxu0 %vm1495_vm0, %v1494_v0  ;;  %v1360_v3 = vld [vmem:[#allocation2] sm:$0xff]   ;;  %vm93_vm1 = vcmask 261120   ;;  %s1496_s6 = smov 96   ;;  %vm146_vm2 = vcmask 64512   ;;  %vm270_vm3 = vcmask 1043456   ;;  %s1499_s7 = smov 56  }
  0x38   :  { %1217 = vmatprep.subr.bf16.mxu1 %v1494_v0  ;;  %1219 = vmatprep.mubr.msk.bf16.mxu1 %vm1495_vm0, %v1494_v0  ;;  %v1142_v4 = vld [vmem:[%s1770_s2] ss:$0 sm:$0xff]  ;;  %s1497_s2 = smov 88   ;;  %s1500_s8 = smov 80   ;;  %vm1048_vm4 = vcmask 130048   ;;  %vm1051_vm5 = vcmask 195584  }
  0x39   :  { %1210 = vmatpush3.bf16.msra.mxu0 %v1358_v1  ;;  %s1501_s9 = smov 112   ;;  %s1502_s10 = smov 48  }
  0x3a   :  { %1211 = vmatprep.subr.bf16.mxu0 %v1494_v0  ;;  %s1503_s11 = smov 72   ;;  %s1504_s12 = smov 104  }
  0x3b   :  { %s1505_s13 = smov 40   ;;  %s1506_s14 = smov 8  }
  0x3c   :  { %s1507_s15 = smov 16   ;;  %s1508_s16 = smov 24  }
  0x3d   :  { %1212 = vmatpush3.bf16.msra.mxu0 %v1359_v2  ;;  %s1509_s18 = smov [#allocation8]  }
  0x3e   :  { %1223 = vmatprep.subr.bf16.mxu0 %v1494_v0  ;;  %s1129_s19 = sshll.u32 %s1509_s18, 4  ;;  %s1130_s19 = int_to_ptr.vmem [resolvable:$true] %s1129_s19 }
  0x3f   :  { %s1461_s20 = scalar_lea.vmem %s1130_s19, 256  ;;  %p1466_p11 = scmp.lt.s32.totalorder %s1130_s19, %s1130_s19 }
  0x40   :  { %1214 = vmatmul.mubr.msk.bf16.vlgmr.msra.gmra.mrb[0].mxu0 %vm93_vm1, %v1360_v3  ;;  %p1462_p10 = scmp.ne.s32.totalorder %s1130_s19, %s1461_s20  ;;  %p1467_p12 = scmp.lt.s32.totalorder %s1461_s20, %s1461_s20 }
  0x41   :  { %1225 = vmatprep.mubr.msk.bf16.mxu0 %vm1495_vm0, %v1494_v0 }
  0x42   :  { %p1468_p13 = por %p1467_p12, %p1466_p11 }
  0x44   :  { %p1469_p0 = pnand %p1468_p13, %p1462_p10 }
 0x113   :  { %v131_v5 = vpop.f32.mrb[0].mxu0 }
 0x114   :  { %v132_v6 = vadd.f32 %v1142_v4, %v131_v5  ;;  %v1215_v7 = vpop.f32.mrb[1].mxu0 }
 0x115   :  { %v134_v8 = vpop.f32.mrb[2].mxu0 }
 0x116   :  { %v1607_v9 = vpack.c.bf16 %v132_v6, %v132_v6  ;;  %v135_v10 = vadd.f32 %v1142_v4, %v134_v8  ;;  %v1216_v11 = vpop.f32.mrb[3].mxu0 }
 0x118   :  { %144 = vrot.lane.b32.xlu0 %v1607_v9, %s1496_s6  ;;  %v1610_v12 = vpack.c.bf16 %v135_v10, %v135_v10 }
 0x11c   :  { %193 = vrot.lane.b32.xlu0 %v1610_v12, %s1496_s6 }
 0x18a   :  { %v145_v13 = vpop.permute.xlu0 %144 }
 0x18b   :  { %v151_v14 = vsel %vm146_vm2, %v145_v13, 0 }
 0x18c   :  { %1218 = vmatpush3.bf16.xpose.msra.mxu1 %v151_v14 }
 0x18d   :  { %1229 = vmatprep.subr.bf16.mxu1 %v1494_v0 }
 0x18e   :  { %v194_v15 = vpop.permute.xlu0 %193 }
 0x18f   :  { %v199_v16 = vsel %vm146_vm2, %v194_v15, 0 }
 0x190   :  { %1224 = vmatpush3.bf16.xpose.msra.mxu0 %v199_v16 }
 0x191   :  { %1235 = vmatprep.subr.bf16.mxu0 %v1494_v0 }
 0x193   :  { %1220 = vmatmul.mubr.msk.bf16.vlgmr.msra.gmra.mrb[0].mxu1 %vm146_vm2, %v1607_v9 }
 0x194   :  { %1231 = vmatprep.mubr.msk.bf16.mxu1 %vm1495_vm0, %v1494_v0 }
 0x197   :  { %1226 = vmatmul.mubr.msk.bf16.vlgmr.msra.gmra.mrb[4].mxu0 %vm146_vm2, %v1610_v12 }
 0x198   :  { %1237 = vmatprep.mubr.msk.bf16.mxu0 %vm1495_vm0, %v1494_v0 }
 0x266   :  { %v187_v17 = vpop.f32.mrb[0].mxu1 }
 0x267   :  { %v1221_v18 = vpop.f32.mrb[1].mxu1  ;;  %v241_v19 = vsel %vm146_vm2, %v187_v17, -inf }
 0x268   :  { %242 = vmax.xlane.f32.xlu1 %v241_v19  ;;  %v190_v20 = vpop.f32.mrb[2].mxu1 }
 0x269   :  { %v1222_v21 = vpop.f32.mrb[3].mxu1 }
 0x26a   :  { %v235_v22 = vpop.f32.mrb[4].mxu0 }
 0x26b   :  { %v1227_v23 = vpop.f32.mrb[5].mxu0  ;;  %v244_v24 = vsel %vm146_vm2, %v235_v22, -inf }
 0x26c   :  { %245 = vmax.xlane.f32.xlu1 %v244_v24  ;;  %v238_v25 = vpop.f32.mrb[6].mxu0 }
 0x26d   :  { %v1228_v26 = vpop.f32.mrb[7].mxu0 }
 0x27d   :  { %265 = vrot.lane.b32.xlu1 %v1607_v9, %s1491_s30 }
 0x281   :  { %314 = vrot.lane.b32.xlu1 %v1610_v12, %s1491_s30  ;;  %s1498_s30 = smov 120  }
 0x285   :  { %364 = vrot.lane.b32.xlu1 %v1607_v9, %s1497_s2 }
 0x2f5   :  { %v243_v27 = vpop.xlane.xlu1 %242 }
 0x2f6   :  { %v247_v28 = vsub.f32 %v187_v17, %v243_v27 }
 0x2f8   :  { %v249_v29 = vmul.f32 1.442695, %v247_v28 }
 0x2f9   :  { %v246_v30 = vpop.xlane.xlu1 %245 }
 0x2fa   :  { %1363 = vpow2.f32 %v249_v29  ;;  %v248_v31 = vsub.f32 %v235_v22, %v246_v30 }
 0x2fc   :  { %v251_v32 = vmul.f32 1.442695, %v248_v31 }
 0x2fd   :  { %v266_v33 = vpop.permute.xlu1 %265 }
 0x2fe   :  { %1365 = vpow2.f32 %v251_v32  ;;  %v272_v34 = vsel %vm270_vm3, %v266_v33, 0 }
 0x2ff   :  { %1230 = vmatpush3.bf16.msra.mxu1 %v272_v34 }
 0x300   :  { %1241 = vmatprep.subr.bf16.mxu1 %v1494_v0 }
 0x301   :  { %v315_v35 = vpop.permute.xlu1 %314 }
 0x302   :  { %v320_v36 = vsel %vm270_vm3, %v315_v35, 0 }
 0x303   :  { %1236 = vmatpush3.bf16.msra.mxu0 %v320_v36 }
 0x304   :  { %v1364_v37 = vpop.eup %1363  ;;  %1247 = vmatprep.subr.bf16.mxu0 %v1494_v0 }
 0x305   :  { %v253_v38 = vsel %vm146_vm2, %v1364_v37, 0.0  ;;  %v365_v41 = vpop.permute.xlu1 %364 }
 0x306   :  { %254 = vadd.xlane.f32.xlu0 %v253_v38  ;;  %v370_v48 = vsel %vm146_vm2, %v365_v41, 0 }
 0x308   :  { %v1366_v39 = vpop.eup %1365 }
 0x309   :  { %v256_v40 = vsel %vm146_vm2, %v1366_v39, 0.0 }
 0x30a   :  { %257 = vadd.xlane.f32.xlu1 %v256_v40 }
 0x31b   :  { %414 = vrot.lane.b32.xlu1 %v1610_v12, %s1497_s2 }
 0x31c   :  { %362 = vrot.lane.b32.xlu0 %v1607_v9, %s1498_s30 }
 0x31f   :  { %412 = vrot.lane.b32.xlu1 %v1610_v12, %s1498_s30 }
 0x393   :  { %v255_v42 = vpop.xlane.xlu0 %254 }
 0x394   :  { %1367 = vrcp.f32 %v255_v42 }
 0x397   :  { %v258_v43 = vpop.xlane.xlu1 %257  ;;  %v363_v53 = vpop.permute.xlu0 %362 }
 0x398   :  { %1369 = vrcp.f32 %v258_v43 }
 0x39b   :  { %v415_v50 = vpop.permute.xlu1 %414 }
 0x39c   :  { %v420_v52 = vsel %vm146_vm2, %v415_v50, 0 }
 0x39e   :  { %v1368_v44 = vpop.eup %1367 }
 0x39f   :  { %v261_v45 = vmul.f32 %v1368_v44, %v1364_v37  ;;  %v413_v54 = vpop.permute.xlu1 %412 }
 0x3a1   :  { %v263_v46 = vpack.c.bf16 %v261_v45, %v261_v45 }
 0x3a2   :  { %v1370_v47 = vpop.eup %1369 }
 0x3a3   :  { %v262_v49 = vmul.f32 %v1370_v47, %v1366_v39  ;;  %1232 = vmatmul.mubr.msk.bf16.vlgmr.msra.gmra.mrb[4].mxu1 %vm146_vm2, %v263_v46 }
 0x3a4   :  { %1242 = vmatpush3.bf16.xpose.msra.mxu1 %v370_v48  ;;  %1243 = vmatprep.mubr.msk.bf16.mxu1 %vm1495_vm0, %v1494_v0 }
 0x3a5   :  { %v264_v51 = vpack.c.bf16 %v262_v49, %v262_v49  ;;  %1253 = vmatprep.subr.bf16.mxu1 %v1494_v0 }
 0x3a7   :  { %1238 = vmatmul.mubr.msk.bf16.vlgmr.msra.gmra.mrb[8].mxu0 %vm146_vm2, %v264_v51 }
 0x3a8   :  { %1248 = vmatpush3.bf16.xpose.msra.mxu0 %v420_v52  ;;  %1249 = vmatprep.mubr.msk.bf16.mxu0 %vm1495_vm0, %v1494_v0 }
 0x3a9   :  { %1259 = vmatprep.subr.bf16.mxu0 %v1494_v0 }
 0x3ab   :  { %1244 = vmatmul.mubr.msk.bf16.vlgmr.msra.gmra.mrb[8].mxu1 %vm146_vm2, %v363_v53 }
 0x3ac   :  { %1255 = vmatprep.mubr.msk.bf16.mxu1 %vm1495_vm0, %v1494_v0 }
 0x3af   :  { %1250 = vmatmul.mubr.msk.bf16.vlgmr.msra.gmra.mrb[12].mxu0 %vm146_vm2, %v413_v54 }
 0x3b0   :  { %1261 = vmatprep.mubr.msk.bf16.mxu0 %vm1495_vm0, %v1494_v0 }
 0x476   :  { %v1657_v55 = vpop.f32.mrb[4].mxu1 }
 0x477   :  { %v1233_v56 = vpop.f32.mrb[5].mxu1 }
 0x478   :  { %v311_v57 = vpop.f32.mrb[6].mxu1 }
 0x479   :  { %v1234_v58 = vpop.f32.mrb[7].mxu1 }
 0x47a   :  { %v1659_v59 = vpop.f32.mrb[8].mxu0 }
 0x47b   :  { %v1239_v60 = vpop.f32.mrb[9].mxu0 }
 0x47c   :  { %v359_v61 = vpop.f32.mrb[10].mxu0 }
 0x47d   :  { %v1240_v62 = vpop.f32.mrb[11].mxu0 }
 0x47e   :  { %v406_v63 = vpop.f32.mrb[8].mxu1 }
 0x47f   :  { %v1245_v1 = vpop.f32.mrb[9].mxu1  ;;  %v462_v2 = vsel %vm146_vm2, %v406_v63, -inf }
 0x480   :  { %463 = vmax.xlane.f32.xlu1 %v462_v2  ;;  %v409_v3 = vpop.f32.mrb[10].mxu1 }
 0x481   :  { %v1246_v4 = vpop.f32.mrb[11].mxu1 }
 0x482   :  { %v456_v5 = vpop.f32.mrb[12].mxu0 }
 0x483   :  { %v1251_v6 = vpop.f32.mrb[13].mxu0  ;;  %v465_v7 = vsel %vm146_vm2, %v456_v5, -inf }
 0x484   :  { %466 = vmax.xlane.f32.xlu0 %v465_v7  ;;  %v459_v8 = vpop.f32.mrb[14].mxu0 }
 0x485   :  { %v1252_v10 = vpop.f32.mrb[15].mxu0 }
 0x491   :  { %486 = vrot.lane.b32.xlu1 %v1607_v9, %s1499_s7 }
 0x495   :  { %584 = vrot.lane.b32.xlu1 %v1607_v9, %s1500_s8 }
 0x49a   :  { %534 = vrot.lane.b32.xlu0 %v1610_v12, %s1499_s7 }
 0x49e   :  { %582 = vrot.lane.b32.xlu0 %v1607_v9, %s1501_s9 }
 0x50d   :  { %v464_v11 = vpop.xlane.xlu1 %463 }
 0x50e   :  { %v468_v13 = vsub.f32 %v406_v63, %v464_v11 }
 0x510   :  { %v470_v14 = vmul.f32 1.442695, %v468_v13 }
 0x511   :  { %v487_v15 = vpop.permute.xlu1 %486  ;;  %v467_v16 = vpop.xlane.xlu0 %466 }
 0x512   :  { %1371 = vpow2.f32 %v470_v14  ;;  %v492_v17 = vsel %vm270_vm3, %v487_v15, 0  ;;  %v469_v18 = vsub.f32 %v456_v5, %v467_v16 }
 0x513   :  { %1254 = vmatpush3.bf16.msra.mxu1 %v492_v17 }
 0x514   :  { %v472_v19 = vmul.f32 1.442695, %v469_v18  ;;  %1265 = vmatprep.subr.bf16.mxu1 %v1494_v0 }
 0x515   :  { %v535_v20 = vpop.permute.xlu0 %534  ;;  %v585_v26 = vpop.permute.xlu1 %584 }
 0x516   :  { %1373 = vpow2.f32 %v472_v19  ;;  %v540_v21 = vsel %vm270_vm3, %v535_v20, 0  ;;  %v590_v33 = vsel %vm146_vm2, %v585_v26, 0 }
 0x517   :  { %1260 = vmatpush3.bf16.msra.mxu0 %v540_v21 }
 0x518   :  { %1271 = vmatprep.subr.bf16.mxu0 %v1494_v0 }
 0x519   :  { %v583_v38 = vpop.permute.xlu0 %582 }
 0x51c   :  { %v1372_v22 = vpop.eup %1371 }
 0x51d   :  { %v474_v23 = vsel %vm146_vm2, %v1372_v22, 0.0 }
 0x51e   :  { %475 = vadd.xlane.f32.xlu1 %v474_v23 }
 0x520   :  { %v1374_v24 = vpop.eup %1373 }
 0x521   :  { %v477_v25 = vsel %vm146_vm2, %v1374_v24, 0.0 }
 0x522   :  { %478 = vadd.xlane.f32.xlu1 %v477_v25 }
 0x533   :  { %634 = vrot.lane.b32.xlu1 %v1610_v12, %s1500_s8 }
 0x537   :  { %632 = vrot.lane.b32.xlu1 %v1610_v12, %s1501_s9 }
 0x5ab   :  { %v476_v27 = vpop.xlane.xlu1 %475 }
 0x5ac   :  { %1375 = vrcp.f32 %v476_v27 }
 0x5af   :  { %v479_v28 = vpop.xlane.xlu1 %478 }
 0x5b0   :  { %1377 = vrcp.f32 %v479_v28 }
 0x5b3   :  { %v635_v35 = vpop.permute.xlu1 %634 }
 0x5b4   :  { %v640_v37 = vsel %vm146_vm2, %v635_v35, 0 }
 0x5b6   :  { %v1376_v29 = vpop.eup %1375 }
 0x5b7   :  { %v482_v30 = vmul.f32 %v1376_v29, %v1372_v22  ;;  %v633_v39 = vpop.permute.xlu1 %632 }
 0x5b9   :  { %v484_v31 = vpack.c.bf16 %v482_v30, %v482_v30 }
 0x5ba   :  { %v1378_v32 = vpop.eup %1377 }
 0x5bb   :  { %v483_v34 = vmul.f32 %v1378_v32, %v1374_v24  ;;  %1256 = vmatmul.mubr.msk.bf16.vlgmr.msra.gmra.mrb[12].mxu1 %vm146_vm2, %v484_v31 }
 0x5bc   :  { %1266 = vmatpush3.bf16.xpose.msra.mxu1 %v590_v33  ;;  %1267 = vmatprep.mubr.msk.bf16.mxu1 %vm1495_vm0, %v1494_v0 }
 0x5bd   :  { %v485_v36 = vpack.c.bf16 %v483_v34, %v483_v34  ;;  %1277 = vmatprep.subr.bf16.mxu1 %v1494_v0 }
 0x5bf   :  { %1262 = vmatmul.mubr.msk.bf16.vlgmr.msra.gmra.mrb[16].mxu0 %vm146_vm2, %v485_v36 }
 0x5c0   :  { %1272 = vmatpush3.bf16.xpose.msra.mxu0 %v640_v37  ;;  %1273 = vmatprep.mubr.msk.bf16.mxu0 %vm1495_vm0, %v1494_v0 }
 0x5c1   :  { %1283 = vmatprep.subr.bf16.mxu0 %v1494_v0 }
 0x5c3   :  { %1268 = vmatmul.mubr.msk.bf16.vlgmr.msra.gmra.mrb[16].mxu1 %vm146_vm2, %v583_v38 }
 0x5c4   :  { %1279 = vmatprep.mubr.msk.bf16.mxu1 %vm1495_vm0, %v1494_v0 }
 0x5c7   :  { %1274 = vmatmul.mubr.msk.bf16.vlgmr.msra.gmra.mrb[20].mxu0 %vm146_vm2, %v633_v39 }
 0x5c8   :  { %1285 = vmatprep.mubr.msk.bf16.mxu0 %vm1495_vm0, %v1494_v0 }
 0x68e   :  { %v1691_v40 = vpop.f32.mrb[12].mxu1 }
 0x68f   :  { %v1257_v41 = vpop.f32.mrb[13].mxu1 }
 0x690   :  { %v531_v42 = vpop.f32.mrb[14].mxu1 }
 0x691   :  { %v1258_v43 = vpop.f32.mrb[15].mxu1 }
 0x692   :  { %v1693_v44 = vpop.f32.mrb[16].mxu0 }
 0x693   :  { %v1343_v45 = vpack.i.bf16 %v1693_v44, %v1691_v40  ;;  %v1263_v46 = vpop.f32.mrb[17].mxu0 }
 0x694   :  { %v579_v47 = vpop.f32.mrb[18].mxu0 }
 0x695   :  { %v1264_v48 = vpop.f32.mrb[19].mxu0 }
 0x696   :  { %v626_v49 = vpop.f32.mrb[16].mxu1 }
 0x697   :  { %v1269_v50 = vpop.f32.mrb[17].mxu1  ;;  %v682_v51 = vsel %vm146_vm2, %v626_v49, -inf }
 0x698   :  { %683 = vmax.xlane.f32.xlu0 %v682_v51  ;;  %v629_v52 = vpop.f32.mrb[18].mxu1 }
 0x699   :  { %v1270_v53 = vpop.f32.mrb[19].mxu1 }
 0x69a   :  { %v676_v54 = vpop.f32.mrb[20].mxu0 }
 0x69b   :  { %v1275_v56 = vpop.f32.mrb[21].mxu0  ;;  %v685_v57 = vsel %vm146_vm2, %v676_v54, -inf }
 0x69c   :  { %686 = vmax.xlane.f32.xlu1 %v685_v57  ;;  %v679_v58 = vpop.f32.mrb[22].mxu0 }
 0x69d   :  { %v1276_v60 = vpop.f32.mrb[23].mxu0 }
 0x6ad   :  { %706 = vrot.lane.b32.xlu1 %v1607_v9, %s1502_s10 }
 0x6b1   :  { %804 = vrot.lane.b32.xlu1 %v1607_v9, %s1503_s11 }
 0x6b5   :  { %854 = vrot.lane.b32.xlu1 %v1610_v12, %s1503_s11 }
 0x6b9   :  { %852 = vrot.lane.b32.xlu1 %v1610_v12, %s1504_s12 }
 0x725   :  { %v684_v61 = vpop.xlane.xlu0 %683 }
 0x726   :  { %v688_v62 = vsub.f32 %v626_v49, %v684_v61 }
 0x728   :  { %v690_v63 = vmul.f32 1.442695, %v688_v62 }
 0x729   :  { %v687_v1 = vpop.xlane.xlu1 %686 }
 0x72a   :  { %1379 = vpow2.f32 %v690_v63  ;;  %v689_v2 = vsub.f32 %v676_v54, %v687_v1 }
 0x72c   :  { %v692_v3 = vmul.f32 1.442695, %v689_v2 }
 0x72d   :  { %v707_v4 = vpop.permute.xlu1 %706 }
 0x72e   :  { %1381 = vpow2.f32 %v692_v3  ;;  %v712_v5 = vsel %vm270_vm3, %v707_v4, 0 }
 0x72f   :  { %1278 = vmatpush3.bf16.msra.mxu1 %v712_v5 }
 0x730   :  { %1289 = vmatprep.subr.bf16.mxu1 %v1494_v0 }
 0x731   :  { %v805_v17 = vpop.permute.xlu1 %804 }
 0x732   :  { %v810_v21 = vsel %vm146_vm2, %v805_v17, 0 }
 0x734   :  { %v1380_v6 = vpop.eup %1379 }
 0x735   :  { %v694_v7 = vsel %vm146_vm2, %v1380_v6, 0.0  ;;  %v855_v23 = vpop.permute.xlu1 %854 }
 0x736   :  { %695 = vadd.xlane.f32.xlu0 %v694_v7  ;;  %v860_v25 = vsel %vm146_vm2, %v855_v23, 0  ;;  %v1362_v7 = vld [vmem:[#allocation7 + $0x8] sm:$0xff]  }
 0x738   :  { %v1382_v8 = vpop.eup %1381 }
 0x739   :  { %v697_v10 = vsel %vm146_vm2, %v1382_v8, 0.0  ;;  %v853_v27 = vpop.permute.xlu1 %852 }
 0x73a   :  { %698 = vadd.xlane.f32.xlu0 %v697_v10 }
 0x750   :  { %754 = vrot.lane.b32.xlu0 %v1610_v12, %s1502_s10 }
 0x754   :  { %802 = vrot.lane.b32.xlu0 %v1607_v9, %s1504_s12 }
 0x7c3   :  { %v696_v11 = vpop.xlane.xlu0 %695 }
 0x7c4   :  { %1383 = vrcp.f32 %v696_v11 }
 0x7c7   :  { %v699_v13 = vpop.xlane.xlu0 %698 }
 0x7c8   :  { %1385 = vrcp.f32 %v699_v13 }
 0x7cb   :  { %v755_v14 = vpop.permute.xlu0 %754 }
 0x7cc   :  { %v760_v15 = vsel %vm270_vm3, %v755_v14, 0 }
 0x7cd   :  { %1284 = vmatpush3.bf16.msra.mxu0 %v760_v15 }
 0x7ce   :  { %v1384_v16 = vpop.eup %1383  ;;  %1295 = vmatprep.subr.bf16.mxu0 %v1494_v0 }
 0x7cf   :  { %v702_v18 = vmul.f32 %v1384_v16, %v1380_v6  ;;  %v803_v26 = vpop.permute.xlu0 %802 }
 0x7d1   :  { %v704_v19 = vpack.c.bf16 %v702_v18, %v702_v18 }
 0x7d2   :  { %v1386_v20 = vpop.eup %1385 }
 0x7d3   :  { %v703_v22 = vmul.f32 %v1386_v20, %v1382_v8  ;;  %1280 = vmatmul.mubr.msk.bf16.vlgmr.msra.gmra.mrb[20].mxu1 %vm146_vm2, %v704_v19 }
 0x7d4   :  { %1290 = vmatpush3.bf16.xpose.msra.mxu1 %v810_v21  ;;  %1291 = vmatprep.mubr.msk.bf16.mxu1 %vm1495_vm0, %v1494_v0 }
 0x7d5   :  { %v705_v24 = vpack.c.bf16 %v703_v22, %v703_v22  ;;  %1301 = vmatprep.subr.bf16.mxu1 %v1494_v0 }
 0x7d7   :  { %1286 = vmatmul.mubr.msk.bf16.vlgmr.msra.gmra.mrb[24].mxu0 %vm146_vm2, %v705_v24 }
 0x7d8   :  { %1296 = vmatpush3.bf16.xpose.msra.mxu0 %v860_v25  ;;  %1297 = vmatprep.mubr.msk.bf16.mxu0 %vm1495_vm0, %v1494_v0 }
 0x7d9   :  { %1307 = vmatprep.subr.bf16.mxu0 %v1494_v0 }
 0x7db   :  { %1292 = vmatmul.mubr.msk.bf16.vlgmr.msra.gmra.mrb[24].mxu1 %vm146_vm2, %v803_v26 }
 0x7dc   :  { %1303 = vmatprep.mubr.msk.bf16.mxu1 %vm1495_vm0, %v1494_v0 }
 0x7df   :  { %1298 = vmatmul.mubr.msk.bf16.vlgmr.msra.gmra.mrb[28].mxu0 %vm146_vm2, %v853_v27 }
 0x7e0   :  { %1309 = vmatprep.mubr.msk.bf16.mxu0 %vm1495_vm0, %v1494_v0 }
 0x8a6   :  { %v748_v28 = vpop.f32.mrb[20].mxu1 }
 0x8a7   :  { %v1281_v29 = vpop.f32.mrb[21].mxu1 }
 0x8a8   :  { %v751_v30 = vpop.f32.mrb[22].mxu1 }
 0x8a9   :  { %v1282_v31 = vpop.f32.mrb[23].mxu1 }
 0x8aa   :  { %v796_v32 = vpop.f32.mrb[24].mxu0 }
 0x8ab   :  { %v1348_v33 = vpack.i.bf16 %v796_v32, %v748_v28  ;;  %v1287_v34 = vpop.f32.mrb[25].mxu0 }
 0x8ac   :  { %v799_v35 = vpop.f32.mrb[26].mxu0  ;;  %v1165_v34 = vld [vmem:[%s1772_s4] ss:$0 sm:$0xff] }
 0x8ad   :  { %v1288_v36 = vpop.f32.mrb[27].mxu0 }
 0x8ae   :  { %v846_v37 = vpop.f32.mrb[24].mxu1 }
 0x8af   :  { %v1293_v38 = vpop.f32.mrb[25].mxu1  ;;  %v902_v39 = vsel %vm146_vm2, %v846_v37, -inf }
 0x8b0   :  { %903 = vmax.xlane.f32.xlu0 %v902_v39  ;;  %v849_v41 = vpop.f32.mrb[26].mxu1 }
 0x8b1   :  { %v1294_v42 = vpop.f32.mrb[27].mxu1 }
 0x8b2   :  { %v896_v43 = vpop.f32.mrb[28].mxu0 }
 0x8b3   :  { %v1299_v46 = vpop.f32.mrb[29].mxu0  ;;  %v905_v47 = vsel %vm146_vm2, %v896_v43, -inf }
 0x8b4   :  { %906 = vmax.xlane.f32.xlu1 %v905_v47  ;;  %v899_v48 = vpop.f32.mrb[30].mxu0 }
 0x8b5   :  { %v1300_v49 = vpop.f32.mrb[31].mxu0 }
 0x8c5   :  { %926 = vrot.lane.b32.xlu1 %v1607_v9, %s1505_s13 }
 0x8c9   :  { %1344 = vrot.lane.b32.xlu1 %v1343_v45, %s1506_s14 }
 0x8cd   :  { %1349 = vrot.lane.b32.xlu1 %v1348_v33, %s1507_s15 }
 0x93d   :  { %v904_v50 = vpop.xlane.xlu0 %903 }
 0x93e   :  { %v908_v51 = vsub.f32 %v846_v37, %v904_v50 }
 0x940   :  { %v910_v52 = vmul.f32 1.442695, %v908_v51 }
 0x941   :  { %v907_v53 = vpop.xlane.xlu1 %906 }
 0x942   :  { %1387 = vpow2.f32 %v910_v52  ;;  %v909_v54 = vsub.f32 %v896_v43, %v907_v53 }
 0x944   :  { %v912_v56 = vmul.f32 1.442695, %v909_v54 }
 0x945   :  { %v927_v57 = vpop.permute.xlu1 %926 }
 0x946   :  { %1389 = vpow2.f32 %v912_v56  ;;  %v932_v58 = vsel %vm270_vm3, %v927_v57, 0 }
 0x947   :  { %1302 = vmatpush3.bf16.msra.mxu1 %v932_v58 }
 0x948   :  { %1313 = vmatprep.subr.bf16.mxu1 %v1494_v0 }
 0x949   :  { %v1345_v19 = vpop.permute.xlu1 %1344 }
 0x94a   :  { %v1347_v21 = vunpack.i.h.bf16 %v1345_v19  ;;  %v1346_v22 = vunpack.i.l.bf16 %v1345_v19 }
 0x94c   :  { %v1388_v9 = vpop.eup %1387  ;;  %v1047_v25 = vsel %vm146_vm2, %v1659_v59, %v1347_v21  ;;  %v1046_v26 = vsel %vm146_vm2, %v1657_v55, %v1346_v22 }
 0x94d   :  { %v914_v40 = vsel %vm146_vm2, %v1388_v9, 0.0  ;;  %v1350_v20 = vpop.permute.xlu1 %1349 }
 0x94e   :  { %915 = vadd.xlane.f32.xlu0 %v914_v40  ;;  %v1352_v23 = vunpack.i.h.bf16 %v1350_v20  ;;  %v1351_v24 = vunpack.i.l.bf16 %v1350_v20 }
 0x950   :  { %v1390_v44 = vpop.eup %1389  ;;  %v1049_v29 = vsel %vm1048_vm4, %v1046_v26, %v1351_v24  ;;  %v1050_v30 = vsel %vm1048_vm4, %v1047_v25, %v1352_v23 }
 0x951   :  { %v917_v45 = vsel %vm146_vm2, %v1390_v44, 0.0 }
 0x952   :  { %918 = vadd.xlane.f32.xlu0 %v917_v45 }
 0x968   :  { %974 = vrot.lane.b32.xlu0 %v1610_v12, %s1505_s13  ;;  %v1361_v12 = vld [vmem:[#allocation7] sm:$0xff]  }
 0x9db   :  { %v916_v60 = vpop.xlane.xlu0 %915 }
 0x9dc   :  { %1391 = vrcp.f32 %v916_v60 }
 0x9df   :  { %v919_v61 = vpop.xlane.xlu0 %918 }
 0x9e0   :  { %1393 = vrcp.f32 %v919_v61 }
 0x9e3   :  { %v975_v62 = vpop.permute.xlu0 %974 }
 0x9e4   :  { %v980_v63 = vsel %vm270_vm3, %v975_v62, 0 }
 0x9e5   :  { %1308 = vmatpush3.bf16.msra.mxu0 %v980_v63 }
 0x9e6   :  { %v1392_v1 = vpop.eup %1391 }
 0x9e7   :  { %v922_v2 = vmul.f32 %v1392_v1, %v1388_v9 }
 0x9e9   :  { %v924_v3 = vpack.c.bf16 %v922_v2, %v922_v2 }
 0x9ea   :  { %v1394_v4 = vpop.eup %1393 }
 0x9eb   :  { %v923_v5 = vmul.f32 %v1394_v4, %v1390_v44  ;;  %1304 = vmatmul.mubr.msk.bf16.vlgmr.msra.gmra.mrb[28].mxu1 %vm146_vm2, %v924_v3 }
 0x9ec   :  { %1317 = vmatprep.mubr.msk.bf16.mxu1 %vm1495_vm0, %v1494_v0  ;;  %1314 = vmatpush3.bf16.msra.mxu1 %v1361_v12 }
 0x9ed   :  { %v925_v6 = vpack.c.bf16 %v923_v5, %v923_v5  ;;  %1315 = vmatprep.subr.bf16.mxu1 %v1494_v0 }
 0x9ef   :  { %1310 = vmatmul.mubr.msk.bf16.vlgmr.msra.gmra.mrb[32].mxu0 %vm146_vm2, %v925_v6 }
 0x9f0   :  { %1316 = vmatpush3.bf16.msra.mxu1 %v1362_v7 }
 0xabe   :  { %v968_v8 = vpop.f32.mrb[28].mxu1 }
 0xabf   :  { %v1305_v10 = vpop.f32.mrb[29].mxu1 }
 0xac0   :  { %v971_v11 = vpop.f32.mrb[30].mxu1 }
 0xac1   :  { %v1306_v13 = vpop.f32.mrb[31].mxu1 }
 0xac2   :  { %v1016_v14 = vpop.f32.mrb[32].mxu0 }
 0xac3   :  { %v1353_v15 = vpack.i.bf16 %v1016_v14, %v968_v8  ;;  %v1311_v16 = vpop.f32.mrb[33].mxu0 }
 0xac4   :  { %v1019_v17 = vpop.f32.mrb[34].mxu0 }
 0xac5   :  { %1354 = vrot.lane.b32.xlu0 %v1353_v15, %s1508_s16  ;;  %v1312_v18 = vpop.f32.mrb[35].mxu0 }
 0xb37   :  { %v1355_v0 = vpop.permute.xlu0 %1354 }
 0xb38   :  { %v1357_v27 = vunpack.i.h.bf16 %v1355_v0  ;;  %v1356_v28 = vunpack.i.l.bf16 %v1355_v0 }
 0xb3a   :  { %v1053_v31 = vsel %vm1051_vm5, %v1050_v30, %v1357_v27  ;;  %v1052_v32 = vsel %vm1051_vm5, %v1049_v29, %v1356_v28 }
 0xb3b   :  { %v1054_v33 = vpack.c.bf16 %v1053_v31, %v1052_v32 }
 0xb3d   :  { %1318 = vmatmul.mubr.msk.bf16.vlgmr.msra.gmra.mrb[32].mxu1 %vm93_vm1, %v1054_v33 }
 0xc10   :  { %v1115_v35 = vpop.f32.mrb[32].mxu1 }
 0xc11   :  { %v1116_v59 = vadd.f32 %v1165_v34, %v1115_v35  ;;  %v1319_v36 = vpop.f32.mrb[33].mxu1 }
 0xc12   :  { %v1118_v37 = vpop.f32.mrb[34].mxu1 }
 0xc13   :  { %1122 = vst.msk [vmem:[#allocation8] sm:$0xff] %vm93_vm1, %v1116_v59  ;;  %v1119_v55 = vadd.f32 %v1165_v34, %v1118_v37  ;;  %v1320_v38 = vpop.f32.mrb[35].mxu1 }
 0xc15   :  { %1123 = vst.msk [vmem:[#allocation8 + $0x8] sm:$0xff] %vm93_vm1, %v1119_v55 }
 0xc16   :  { %1472 = shalt.err (!%p1469_p0)
}
 0xc17   :  { %s1473_s23 = scalar_lea.hbm %s1773_s5, 256 }
 0xc18   :  { %p1474_p1 = scmp.ne.s32.totalorder %s1773_s5, %s1473_s23  ;;  %p1477_p2 = scmp.lt.u32.totalorder %s1473_s23, %s1773_s5 }
 0xc1a   :  { %p1479_p3 = pnand %p1477_p2, %p1474_p1 }
 0xc1c   :  { %1482 = shalt.err (!%p1479_p3)
}
 0xc1d   :  { %s1510_s28 = smov 128  }
 0xc1e   :  { %1135 = dma.vmem_to_hbm [thread:$0]  %s1130_s19, 256, %s1773_s5, [#allocation4], %s1510_s28, %s1510_s28, %s1506_s14  }
 0xc1f   :  { %1487 = dma.done.wait [#allocation4], 256  }
 0xc20   :  { %1488 = vsyncadd [#allocation4], 4294967040 }
 0xc21   :  { %1139 = vsyncpa [#allocation3], 1 }
 0xc22   :  { %1140 = vsyncpa [#allocation6], 1 }
 0xc23   :  { %1141 = vsyncpa [#allocation4], 1 }

</bundles_post_ra>
